<compile_context>
chip_gen: v7x
topology: tpu7x:2x2x1
jax: 0.10.0
libtpu: 0.0.40
codegen_flags: <defaults>
</compile_context>

<pallas_src>
import math

import jax
import jax.numpy as jnp
from jax import lax
from jax.experimental import pallas as pl
from jax.experimental.pallas import tpu as pltpu

# ---- small, self-consistent "BERT" config -----------------------------------
B = 2            # batch
S = 8            # sequence length
H = 32           # hidden size
NH = 4           # attention heads
HD = H // NH     # head dim
FF = 64          # intermediate (FFN) size
NL = 2           # number of encoder layers
VOCAB = 100      # vocab size
MAXPOS = 16      # max position embeddings
NUM_LABELS = 3   # classifier output size
OUT_PAD = 128    # lane-dense padded classifier width
EPS = 1e-12      # BERT LayerNorm eps
SCALE = 1.0 / math.sqrt(HD)
T = B * S        # total tokens

# packed per-layer vector buffer layout (shape (NL, NV, H)):
#   0:bo 1:attn_ln_g 2:attn_ln_b 3:b2 4:ffn_ln_g 5:ffn_ln_b
NV = 6

VMEM_SPEC = pl.BlockSpec(memory_space=pltpu.MemorySpace.VMEM)


# ---------------------------- in-kernel helpers -------------------------------
def _layernorm(x, g, b):
    # f32 statistics (no bf16 VPU on v5e)
    mu = jnp.mean(x, axis=-1, keepdims=True)
    var = jnp.mean((x - mu) ** 2, axis=-1, keepdims=True)
    return (x - mu) * lax.rsqrt(var + EPS) * g + b


def _gelu(x):
    # TODO(synk): HF BERT default is erf-based gelu; tanh approximation used
    # here (== HF "gelu_new"), erf has no guaranteed Mosaic lowering.
    c = math.sqrt(2.0 / math.pi)
    return 0.5 * x * (1.0 + jnp.tanh(c * (x + 0.044715 * x * x * x)))


# ------------------------------- fused kernel ---------------------------------
def bert_fused_kernel(emb_ref, mask_ref,
                      wqkv_ref, bqkv_ref, wo_ref,
                      wfc1_ref, b1_ref, wfc2_ref,
                      vec_ref, embln_ref,
                      poolw_ref, poolb_ref, clsw_ref, clsb_ref,
                      out_ref):
    # ---- embeddings: gather + sum done outside (glue); LayerNorm here ----
    x = _layernorm(emb_ref[...], embln_ref[0:1, :], embln_ref[1:2, :])   # (T,H) f32
    mask_add = mask_ref[...]                                             # (NH*B,1,S) f32

    # ---- encoder layers (static, fully unrolled; see header comment) ----
    for l in range(NL):
        vec_l = vec_ref[l]                                               # (NV, H)
        bo, g_att, b_att = vec_l[0:1], vec_l[1:2], vec_l[2:3]
        b2, g_ffn, b_ffn = vec_l[3:4], vec_l[4:5], vec_l[5:6]

        # fused QKV projection: one bf16 matmul, f32 accumulation
        x_b = x.astype(jnp.bfloat16)
        qkv = jnp.dot(x_b, wqkv_ref[l],
                      preferred_element_type=jnp.float32) + bqkv_ref[l]  # (T,3H) f32

        # gather all heads onto one leading batch axis -> (NH*B, S, HD);
        # batch index = h*B + b (leading-dim concat + leading-dim reshape only,
        # minor dim untouched -> no lane relayout of the head dim needed later)
        def heads(off):
            return jnp.concatenate(
                [qkv[:, off + h * HD: off + (h + 1) * HD] for h in range(NH)],
                axis=0).reshape(NH * B, S, HD)

        qh = heads(0).astype(jnp.bfloat16)
        kh = heads(H).astype(jnp.bfloat16)
        vh = heads(2 * H).astype(jnp.bfloat16)

        # one batched score einsum + one batched context einsum for ALL heads
        s = jnp.einsum('bqd,bkd->bqk', qh, kh,
                       preferred_element_type=jnp.float32) * SCALE       # (NH*B,S,S)
        s = s + mask_add
        s = s - jnp.max(s, axis=-1, keepdims=True)                       # f32 softmax
        p = jnp.exp(s)
        p = p * pl.reciprocal(jnp.sum(p, axis=-1, keepdims=True), approx=True)
        ctx = jnp.einsum('bqk,bkd->bqd', p.astype(jnp.bfloat16), vh,
                         preferred_element_type=jnp.float32)             # (NH*B,S,HD)

        # reassemble (T,H) context once and do a SINGLE K=H output projection
        ctx_th = jnp.concatenate(
            [ctx[h * B:(h + 1) * B].reshape(T, HD) for h in range(NH)],
            axis=-1)                                                     # (T,H) f32
        attn = jnp.dot(ctx_th.astype(jnp.bfloat16), wo_ref[l],
                       preferred_element_type=jnp.float32) + bo
        x = _layernorm(attn + x, g_att, b_att)

        # FFN (bf16 matmuls, f32 accumulate / gelu / LN)
        x_b = x.astype(jnp.bfloat16)
        inter = _gelu(jnp.dot(x_b, wfc1_ref[l],
                              preferred_element_type=jnp.float32) + b1_ref[l])
        ffo = jnp.dot(inter.astype(jnp.bfloat16), wfc2_ref[l],
                      preferred_element_type=jnp.float32) + b2
        x = _layernorm(ffo + x, g_ffn, b_ffn)

    # ---- pooler ([CLS] token) + classifier ----
    # touch only the B needed rows (rows 0, S, 2S, ...) -- no full (T,H) reshape
    cls = jnp.concatenate([x[b * S: b * S + 1, :] for b in range(B)], axis=0)  # (B,H)
    pooled = jnp.tanh(jnp.dot(cls.astype(jnp.bfloat16), poolw_ref[...],
                              preferred_element_type=jnp.float32) + poolb_ref[...])
    # lane-dense (B, 128) store; real logits are the first NUM_LABELS lanes
    out_ref[...] = jnp.dot(pooled.astype(jnp.bfloat16), clsw_ref[...],
                           preferred_element_type=jnp.float32) + clsb_ref[...]


# ------------------------------ wrapper ---------------------------------------
def _bert_forward_impl(params, input_ids, attention_mask):
    # Embedding table gathers are plain-JAX glue; everything else is one kernel.
    ids = input_ids.reshape(-1)
    we = jnp.take(params["word_emb"], ids, axis=0)                       # (T, H)
    pos_ids = jnp.tile(jnp.arange(S, dtype=jnp.int32), (B,))
    pe = jnp.take(params["pos_emb"], pos_ids, axis=0)
    # TODO(synk): token_type_ids hard-coded to zeros; dropout omitted (eval mode)
    te = jnp.take(params["type_emb"], jnp.zeros((T,), jnp.int32), axis=0)
    emb = (we + pe + te).astype(jnp.float32)                             # (T, H)

    # additive mask, computed once, replicated per head (batch index = h*B + b)
    mask_add = ((1.0 - attention_mask.astype(jnp.float32))
                * -10000.0)[:, None, :]                                  # (B, 1, S)
    mask_add = jnp.tile(mask_add, (NH, 1, 1))                            # (NH*B, 1, S)

    logits_pad = pl.pallas_call(
        bert_fused_kernel,
        out_shape=jax.ShapeDtypeStruct((B, OUT_PAD), jnp.float32),
        in_specs=[VMEM_SPEC] * 14,
        out_specs=VMEM_SPEC,
    )(emb, mask_add,
      params["w_qkv"], params["b_qkv"], params["w_o"],
      params["w_fc1"], params["b1"], params["w_fc2"],
      params["vec"], params["emb_ln"],
      params["pool_w"], params["pool_b"],
      params["cls_w"], params["cls_b"])
    return logits_pad[:, :NUM_LABELS]


bert_sft_forward = jax.jit(_bert_forward_impl)


# ---------------------------- parameters ---------------------------------------
def init_params(key):
    def nrm(k, shape, std=0.02, dtype=jnp.float32):
        return (std * jax.random.normal(k, shape)).astype(dtype)

    keys = jax.random.split(key, 9)

    # packed per-layer vectors: biases zero, LN gammas one
    vec = jnp.zeros((NL, NV, H), jnp.float32)
    vec = vec.at[:, 1, :].set(1.0)   # attn_ln_g
    vec = vec.at[:, 4, :].set(1.0)   # ffn_ln_g

    # classifier padded to 128 output lanes (real weights in first NUM_LABELS)
    cls_w = jnp.zeros((H, OUT_PAD), jnp.float32)
    cls_w = cls_w.at[:, :NUM_LABELS].set(0.02 * jax.random.normal(keys[8], (H, NUM_LABELS)))

    return {
        "word_emb": nrm(keys[0], (VOCAB, H)),
        "pos_emb": nrm(keys[1], (MAXPOS, H)),
        "type_emb": nrm(keys[2], (2, H)),
        "emb_ln": jnp.concatenate([jnp.ones((1, H), jnp.float32),
                                   jnp.zeros((1, H), jnp.float32)], axis=0),
        # bf16 weights (MXU-native); f32 biases / LN params
        "w_qkv": nrm(keys[3], (NL, H, 3 * H), dtype=jnp.bfloat16),   # [Wq | Wk | Wv]
        "b_qkv": jnp.zeros((NL, 1, 3 * H), jnp.float32),
        "w_o": nrm(keys[4], (NL, H, H), dtype=jnp.bfloat16),
        "w_fc1": nrm(keys[5], (NL, H, FF), dtype=jnp.bfloat16),
        "b1": jnp.zeros((NL, 1, FF), jnp.float32),
        "w_fc2": nrm(keys[6], (NL, FF, H), dtype=jnp.bfloat16),
        "vec": vec,                               # packed biases + LN params
        "pool_w": nrm(keys[7], (H, H), dtype=jnp.bfloat16),
        "pool_b": jnp.zeros((1, H), jnp.float32),
        "cls_w": cls_w.astype(jnp.bfloat16),
        "cls_b": jnp.zeros((1, OUT_PAD), jnp.float32),
    }


# -------------------------------- main -------------------------------------------
if __name__ == "__main__":
    key = jax.random.PRNGKey(0)
    k_param, k_ids = jax.random.split(key)

    params = init_params(k_param)

    input_ids = jax.random.randint(k_ids, (B, S), 0, VOCAB, dtype=jnp.int32)
    # mask out the last two tokens of the second sequence to exercise masking
    attention_mask = jnp.ones((B, S), jnp.int32).at[1, S - 2:].set(0)

    logits = bert_sft_forward(params, input_ids, attention_mask)
    jax.block_until_ready(logits)

    assert logits.shape == (B, NUM_LABELS)
    assert logits.dtype == jnp.float32
    assert bool(jnp.all(jnp.isfinite(logits)))
    print("KERNEL_OK")
</pallas_src>

<mosaic_0001>
module attributes {stable_mosaic.version = 11 : i64} {
  func.func @bert_fused_kernel(%arg0: memref<16x32xf32, #tpu.memory_space<vmem>>, %arg1: memref<8x1x8xf32, #tpu.memory_space<vmem>>, %arg2: memref<2x32x96xbf16, #tpu.memory_space<vmem>>, %arg3: memref<2x1x96xf32, #tpu.memory_space<vmem>>, %arg4: memref<2x32x32xbf16, #tpu.memory_space<vmem>>, %arg5: memref<2x32x64xbf16, #tpu.memory_space<vmem>>, %arg6: memref<2x1x64xf32, #tpu.memory_space<vmem>>, %arg7: memref<2x64x32xbf16, #tpu.memory_space<vmem>>, %arg8: memref<2x6x32xf32, #tpu.memory_space<vmem>>, %arg9: memref<2x32xf32, #tpu.memory_space<vmem>>, %arg10: memref<32x32xbf16, #tpu.memory_space<vmem>>, %arg11: memref<1x32xf32, #tpu.memory_space<vmem>>, %arg12: memref<32x128xbf16, #tpu.memory_space<vmem>>, %arg13: memref<1x128xf32, #tpu.memory_space<vmem>>, %arg14: memref<2x128xf32, #tpu.memory_space<vmem>>) attributes {dimension_semantics = [], scalar_prefetch = 0 : i64, scratch_operands = 0 : i64, tpu.core_type = #tpu.core_type<tc>} {
    %c0 = arith.constant 0 : index
    %c0_0 = arith.constant 0 : index
    %0 = vector.load %arg0[%c0, %c0_0] : memref<16x32xf32, #tpu.memory_space<vmem>>, vector<16x32xf32>
    %c0_1 = arith.constant 0 : index
    %c0_2 = arith.constant 0 : index
    %1 = vector.load %arg9[%c0_1, %c0_2] : memref<2x32xf32, #tpu.memory_space<vmem>>, vector<1x32xf32>
    %c1 = arith.constant 1 : index
    %c0_3 = arith.constant 0 : index
    %2 = vector.load %arg9[%c1, %c0_3] : memref<2x32xf32, #tpu.memory_space<vmem>>, vector<1x32xf32>
    %cst = arith.constant dense<0.000000e+00> : vector<16xf32>
    %3 = vector.multi_reduction <add>, %0, %cst [1] : vector<16x32xf32> to vector<16xf32>
    %4 = vector.shape_cast %3 : vector<16xf32> to vector<16x1xf32>
    %cst_4 = arith.constant 3.200000e+01 : f32
    %5 = vector.broadcast %cst_4 : f32 to vector<16x1xf32>
    %6 = arith.divf %4, %5 : vector<16x1xf32>
    %7 = vector.broadcast %6 : vector<16x1xf32> to vector<16x32xf32>
    %8 = arith.subf %0, %7 : vector<16x32xf32>
    %9 = arith.mulf %8, %8 : vector<16x32xf32>
    %cst_5 = arith.constant dense<0.000000e+00> : vector<16xf32>
    %10 = vector.multi_reduction <add>, %9, %cst_5 [1] : vector<16x32xf32> to vector<16xf32>
    %11 = vector.shape_cast %10 : vector<16xf32> to vector<16x1xf32>
    %cst_6 = arith.constant 3.200000e+01 : f32
    %12 = vector.broadcast %cst_6 : f32 to vector<16x1xf32>
    %13 = arith.divf %11, %12 : vector<16x1xf32>
    %14 = vector.broadcast %6 : vector<16x1xf32> to vector<16x32xf32>
    %15 = arith.subf %0, %14 : vector<16x32xf32>
    %cst_7 = arith.constant 9.99999996E-13 : f32
    %16 = vector.broadcast %cst_7 : f32 to vector<16x1xf32>
    %17 = arith.addf %13, %16 : vector<16x1xf32>
    %18 = math.rsqrt %17 : vector<16x1xf32>
    %19 = vector.broadcast %18 : vector<16x1xf32> to vector<16x32xf32>
    %20 = arith.mulf %15, %19 : vector<16x32xf32>
    %21 = vector.broadcast %1 : vector<1x32xf32> to vector<16x32xf32>
    %22 = arith.mulf %20, %21 : vector<16x32xf32>
    %23 = vector.broadcast %2 : vector<1x32xf32> to vector<16x32xf32>
    %24 = arith.addf %22, %23 : vector<16x32xf32>
    %c0_8 = arith.constant 0 : index
    %c0_9 = arith.constant 0 : index
    %c0_10 = arith.constant 0 : index
    %25 = vector.load %arg1[%c0_8, %c0_9, %c0_10] : memref<8x1x8xf32, #tpu.memory_space<vmem>>, vector<8x1x8xf32>
    %c0_11 = arith.constant 0 : index
    %c0_12 = arith.constant 0 : index
    %c0_13 = arith.constant 0 : index
    %26 = vector.load %arg8[%c0_11, %c0_12, %c0_13] : memref<2x6x32xf32, #tpu.memory_space<vmem>>, vector<1x6x32xf32>
    %27 = vector.shape_cast %26 : vector<1x6x32xf32> to vector<6x32xf32>
    %28 = vector.extract_strided_slice %27 {offsets = [0, 0], sizes = [1, 32], strides = [1, 1]} : vector<6x32xf32> to vector<1x32xf32>
    %29 = vector.extract_strided_slice %27 {offsets = [1, 0], sizes = [1, 32], strides = [1, 1]} : vector<6x32xf32> to vector<1x32xf32>
    %30 = vector.extract_strided_slice %27 {offsets = [2, 0], sizes = [1, 32], strides = [1, 1]} : vector<6x32xf32> to vector<1x32xf32>
    %31 = vector.extract_strided_slice %27 {offsets = [3, 0], sizes = [1, 32], strides = [1, 1]} : vector<6x32xf32> to vector<1x32xf32>
    %32 = vector.extract_strided_slice %27 {offsets = [4, 0], sizes = [1, 32], strides = [1, 1]} : vector<6x32xf32> to vector<1x32xf32>
    %33 = vector.extract_strided_slice %27 {offsets = [5, 0], sizes = [1, 32], strides = [1, 1]} : vector<6x32xf32> to vector<1x32xf32>
    %34 = arith.truncf %24 : vector<16x32xf32> to vector<16x32xbf16>
    %c0_14 = arith.constant 0 : index
    %c0_15 = arith.constant 0 : index
    %c0_16 = arith.constant 0 : index
    %35 = vector.load %arg2[%c0_14, %c0_15, %c0_16] : memref<2x32x96xbf16, #tpu.memory_space<vmem>>, vector<1x32x96xbf16>
    %36 = vector.shape_cast %35 : vector<1x32x96xbf16> to vector<32x96xbf16>
    %cst_17 = arith.constant dense<0.000000e+00> : vector<16x96xf32>
    %37 = tpu.matmul %34, %36, %cst_17 {dimension_numbers = #tpu.dot_dimension_numbers<[1], [0], [0], [1], [0, 0, 1, 1], [], []>} : vector<16x32xbf16>, vector<32x96xbf16>, vector<16x96xf32> -> vector<16x96xf32>
    %c0_18 = arith.constant 0 : index
    %c0_19 = arith.constant 0 : index
    %c0_20 = arith.constant 0 : index
    %38 = vector.load %arg3[%c0_18, %c0_19, %c0_20] : memref<2x1x96xf32, #tpu.memory_space<vmem>>, vector<1x1x96xf32>
    %39 = vector.shape_cast %38 : vector<1x1x96xf32> to vector<1x96xf32>
    %40 = vector.broadcast %39 : vector<1x96xf32> to vector<16x96xf32>
    %41 = arith.addf %37, %40 : vector<16x96xf32>
    %42 = vector.extract_strided_slice %41 {offsets = [0, 0], sizes = [16, 8], strides = [1, 1]} : vector<16x96xf32> to vector<16x8xf32>
    %43 = vector.extract_strided_slice %41 {offsets = [0, 8], sizes = [16, 8], strides = [1, 1]} : vector<16x96xf32> to vector<16x8xf32>
    %44 = vector.extract_strided_slice %41 {offsets = [0, 16], sizes = [16, 8], strides = [1, 1]} : vector<16x96xf32> to vector<16x8xf32>
    %45 = vector.extract_strided_slice %41 {offsets = [0, 24], sizes = [16, 8], strides = [1, 1]} : vector<16x96xf32> to vector<16x8xf32>
    %46 = tpu.concatenate %42, %43, %44, %45 in 0 : vector<16x8xf32>, vector<16x8xf32>, vector<16x8xf32>, vector<16x8xf32> -> vector<64x8xf32>
    %47 = vector.shape_cast %46 : vector<64x8xf32> to vector<8x8x8xf32>
    %48 = arith.truncf %47 : vector<8x8x8xf32> to vector<8x8x8xbf16>
    %49 = vector.extract_strided_slice %41 {offsets = [0, 32], sizes = [16, 8], strides = [1, 1]} : vector<16x96xf32> to vector<16x8xf32>
    %50 = vector.extract_strided_slice %41 {offsets = [0, 40], sizes = [16, 8], strides = [1, 1]} : vector<16x96xf32> to vector<16x8xf32>
    %51 = vector.extract_strided_slice %41 {offsets = [0, 48], sizes = [16, 8], strides = [1, 1]} : vector<16x96xf32> to vector<16x8xf32>
    %52 = vector.extract_strided_slice %41 {offsets = [0, 56], sizes = [16, 8], strides = [1, 1]} : vector<16x96xf32> to vector<16x8xf32>
    %53 = tpu.concatenate %49, %50, %51, %52 in 0 : vector<16x8xf32>, vector<16x8xf32>, vector<16x8xf32>, vector<16x8xf32> -> vector<64x8xf32>
    %54 = vector.shape_cast %53 : vector<64x8xf32> to vector<8x8x8xf32>
    %55 = arith.truncf %54 : vector<8x8x8xf32> to vector<8x8x8xbf16>
    %56 = vector.extract_strided_slice %41 {offsets = [0, 64], sizes = [16, 8], strides = [1, 1]} : vector<16x96xf32> to vector<16x8xf32>
    %57 = vector.extract_strided_slice %41 {offsets = [0, 72], sizes = [16, 8], strides = [1, 1]} : vector<16x96xf32> to vector<16x8xf32>
    %58 = vector.extract_strided_slice %41 {offsets = [0, 80], sizes = [16, 8], strides = [1, 1]} : vector<16x96xf32> to vector<16x8xf32>
    %59 = vector.extract_strided_slice %41 {offsets = [0, 88], sizes = [16, 8], strides = [1, 1]} : vector<16x96xf32> to vector<16x8xf32>
    %60 = tpu.concatenate %56, %57, %58, %59 in 0 : vector<16x8xf32>, vector<16x8xf32>, vector<16x8xf32>, vector<16x8xf32> -> vector<64x8xf32>
    %61 = vector.shape_cast %60 : vector<64x8xf32> to vector<8x8x8xf32>
    %62 = arith.truncf %61 : vector<8x8x8xf32> to vector<8x8x8xbf16>
    "tpu.trace_start"() <{level = 10 : i32, message = "bqd,bkd->bqk"}> : () -> ()
    %cst_21 = arith.constant dense<0.000000e+00> : vector<8x8x8xf32>
    %63 = tpu.matmul %48, %55, %cst_21 {dimension_numbers = #tpu.dot_dimension_numbers<[2], [2], [1], [1], [0, 0, 0, 1, 1, 1], [0], [0]>} : vector<8x8x8xbf16>, vector<8x8x8xbf16>, vector<8x8x8xf32> -> vector<8x8x8xf32>
    "tpu.trace_stop"() : () -> ()
    %cst_22 = arith.constant 0.353553385 : f32
    %64 = vector.broadcast %cst_22 : f32 to vector<8x8x8xf32>
    %65 = arith.mulf %63, %64 : vector<8x8x8xf32>
    %66 = vector.broadcast %25 : vector<8x1x8xf32> to vector<8x8x8xf32>
    %67 = arith.addf %65, %66 : vector<8x8x8xf32>
    %cst_23 = arith.constant dense<0xFF800000> : vector<8x8xf32>
    %68 = vector.multi_reduction <maximumf>, %67, %cst_23 [2] : vector<8x8x8xf32> to vector<8x8xf32>
    %69 = vector.shape_cast %68 : vector<8x8xf32> to vector<8x8x1xf32>
    %70 = vector.broadcast %69 : vector<8x8x1xf32> to vector<8x8x8xf32>
    %71 = arith.subf %67, %70 : vector<8x8x8xf32>
    %72 = math.exp %71 : vector<8x8x8xf32>
    %cst_24 = arith.constant dense<0.000000e+00> : vector<8x8xf32>
    %73 = vector.multi_reduction <add>, %72, %cst_24 [2] : vector<8x8x8xf32> to vector<8x8xf32>
    %74 = vector.shape_cast %73 : vector<8x8xf32> to vector<8x8x1xf32>
    %75 = tpu.reciprocal %74 {approx = true} : vector<8x8x1xf32> -> vector<8x8x1xf32>
    %76 = vector.broadcast %75 : vector<8x8x1xf32> to vector<8x8x8xf32>
    %77 = arith.mulf %72, %76 : vector<8x8x8xf32>
    %78 = arith.truncf %77 : vector<8x8x8xf32> to vector<8x8x8xbf16>
    "tpu.trace_start"() <{level = 10 : i32, message = "bqk,bkd->bqd"}> : () -> ()
    %cst_25 = arith.constant dense<0.000000e+00> : vector<8x8x8xf32>
    %79 = tpu.matmul %78, %62, %cst_25 {dimension_numbers = #tpu.dot_dimension_numbers<[2], [1], [1], [2], [0, 0, 0, 1, 1, 2], [0], [0]>} : vector<8x8x8xbf16>, vector<8x8x8xbf16>, vector<8x8x8xf32> -> vector<8x8x8xf32>
    "tpu.trace_stop"() : () -> ()
    %80 = vector.extract_strided_slice %79 {offsets = [0, 0, 0], sizes = [2, 8, 8], strides = [1, 1, 1]} : vector<8x8x8xf32> to vector<2x8x8xf32>
    %81 = vector.shape_cast %80 : vector<2x8x8xf32> to vector<16x8xf32>
    %82 = vector.extract_strided_slice %79 {offsets = [2, 0, 0], sizes = [2, 8, 8], strides = [1, 1, 1]} : vector<8x8x8xf32> to vector<2x8x8xf32>
    %83 = vector.shape_cast %82 : vector<2x8x8xf32> to vector<16x8xf32>
    %84 = vector.extract_strided_slice %79 {offsets = [4, 0, 0], sizes = [2, 8, 8], strides = [1, 1, 1]} : vector<8x8x8xf32> to vector<2x8x8xf32>
    %85 = vector.shape_cast %84 : vector<2x8x8xf32> to vector<16x8xf32>
    %86 = vector.extract_strided_slice %79 {offsets = [6, 0, 0], sizes = [2, 8, 8], strides = [1, 1, 1]} : vector<8x8x8xf32> to vector<2x8x8xf32>
    %87 = vector.shape_cast %86 : vector<2x8x8xf32> to vector<16x8xf32>
    %88 = tpu.concatenate %81, %83, %85, %87 in 1 : vector<16x8xf32>, vector<16x8xf32>, vector<16x8xf32>, vector<16x8xf32> -> vector<16x32xf32>
    %89 = arith.truncf %88 : vector<16x32xf32> to vector<16x32xbf16>
    %c0_26 = arith.constant 0 : index
    %c0_27 = arith.constant 0 : index
    %c0_28 = arith.constant 0 : index
    %90 = vector.load %arg4[%c0_26, %c0_27, %c0_28] : memref<2x32x32xbf16, #tpu.memory_space<vmem>>, vector<1x32x32xbf16>
    %91 = vector.shape_cast %90 : vector<1x32x32xbf16> to vector<32x32xbf16>
    %cst_29 = arith.constant dense<0.000000e+00> : vector<16x32xf32>
    %92 = tpu.matmul %89, %91, %cst_29 {dimension_numbers = #tpu.dot_dimension_numbers<[1], [0], [0], [1], [0, 0, 1, 1], [], []>} : vector<16x32xbf16>, vector<32x32xbf16>, vector<16x32xf32> -> vector<16x32xf32>
    %93 = vector.broadcast %28 : vector<1x32xf32> to vector<16x32xf32>
    %94 = arith.addf %92, %93 : vector<16x32xf32>
    %95 = arith.addf %94, %24 : vector<16x32xf32>
    %cst_30 = arith.constant dense<0.000000e+00> : vector<16xf32>
    %96 = vector.multi_reduction <add>, %95, %cst_30 [1] : vector<16x32xf32> to vector<16xf32>
    %97 = vector.shape_cast %96 : vector<16xf32> to vector<16x1xf32>
    %cst_31 = arith.constant 3.200000e+01 : f32
    %98 = vector.broadcast %cst_31 : f32 to vector<16x1xf32>
    %99 = arith.divf %97, %98 : vector<16x1xf32>
    %100 = vector.broadcast %99 : vector<16x1xf32> to vector<16x32xf32>
    %101 = arith.subf %95, %100 : vector<16x32xf32>
    %102 = arith.mulf %101, %101 : vector<16x32xf32>
    %cst_32 = arith.constant dense<0.000000e+00> : vector<16xf32>
    %103 = vector.multi_reduction <add>, %102, %cst_32 [1] : vector<16x32xf32> to vector<16xf32>
    %104 = vector.shape_cast %103 : vector<16xf32> to vector<16x1xf32>
    %cst_33 = arith.constant 3.200000e+01 : f32
    %105 = vector.broadcast %cst_33 : f32 to vector<16x1xf32>
    %106 = arith.divf %104, %105 : vector<16x1xf32>
    %107 = vector.broadcast %99 : vector<16x1xf32> to vector<16x32xf32>
    %108 = arith.subf %95, %107 : vector<16x32xf32>
    %cst_34 = arith.constant 9.99999996E-13 : f32
    %109 = vector.broadcast %cst_34 : f32 to vector<16x1xf32>
    %110 = arith.addf %106, %109 : vector<16x1xf32>
    %111 = math.rsqrt %110 : vector<16x1xf32>
    %112 = vector.broadcast %111 : vector<16x1xf32> to vector<16x32xf32>
    %113 = arith.mulf %108, %112 : vector<16x32xf32>
    %114 = vector.broadcast %29 : vector<1x32xf32> to vector<16x32xf32>
    %115 = arith.mulf %113, %114 : vector<16x32xf32>
    %116 = vector.broadcast %30 : vector<1x32xf32> to vector<16x32xf32>
    %117 = arith.addf %115, %116 : vector<16x32xf32>
    %118 = arith.truncf %117 : vector<16x32xf32> to vector<16x32xbf16>
    %c0_35 = arith.constant 0 : index
    %c0_36 = arith.constant 0 : index
    %c0_37 = arith.constant 0 : index
    %119 = vector.load %arg5[%c0_35, %c0_36, %c0_37] : memref<2x32x64xbf16, #tpu.memory_space<vmem>>, vector<1x32x64xbf16>
    %120 = vector.shape_cast %119 : vector<1x32x64xbf16> to vector<32x64xbf16>
    %cst_38 = arith.constant dense<0.000000e+00> : vector<16x64xf32>
    %121 = tpu.matmul %118, %120, %cst_38 {dimension_numbers = #tpu.dot_dimension_numbers<[1], [0], [0], [1], [0, 0, 1, 1], [], []>} : vector<16x32xbf16>, vector<32x64xbf16>, vector<16x64xf32> -> vector<16x64xf32>
    %c0_39 = arith.constant 0 : index
    %c0_40 = arith.constant 0 : index
    %c0_41 = arith.constant 0 : index
    %122 = vector.load %arg6[%c0_39, %c0_40, %c0_41] : memref<2x1x64xf32, #tpu.memory_space<vmem>>, vector<1x1x64xf32>
    %123 = vector.shape_cast %122 : vector<1x1x64xf32> to vector<1x64xf32>
    %124 = vector.broadcast %123 : vector<1x64xf32> to vector<16x64xf32>
    %125 = arith.addf %121, %124 : vector<16x64xf32>
    %cst_42 = arith.constant 5.000000e-01 : f32
    %126 = vector.broadcast %cst_42 : f32 to vector<16x64xf32>
    %127 = arith.mulf %126, %125 : vector<16x64xf32>
    %cst_43 = arith.constant 4.471500e-02 : f32
    %128 = vector.broadcast %cst_43 : f32 to vector<16x64xf32>
    %129 = arith.mulf %128, %125 : vector<16x64xf32>
    %130 = arith.mulf %129, %125 : vector<16x64xf32>
    %131 = arith.mulf %130, %125 : vector<16x64xf32>
    %132 = arith.addf %125, %131 : vector<16x64xf32>
    %cst_44 = arith.constant 0.797884583 : f32
    %133 = vector.broadcast %cst_44 : f32 to vector<16x64xf32>
    %134 = arith.mulf %133, %132 : vector<16x64xf32>
    %135 = math.tanh %134 : vector<16x64xf32>
    %cst_45 = arith.constant 1.000000e+00 : f32
    %136 = vector.broadcast %cst_45 : f32 to vector<16x64xf32>
    %137 = arith.addf %136, %135 : vector<16x64xf32>
    %138 = arith.mulf %127, %137 : vector<16x64xf32>
    %139 = arith.truncf %138 : vector<16x64xf32> to vector<16x64xbf16>
    %c0_46 = arith.constant 0 : index
    %c0_47 = arith.constant 0 : index
    %c0_48 = arith.constant 0 : index
    %140 = vector.load %arg7[%c0_46, %c0_47, %c0_48] : memref<2x64x32xbf16, #tpu.memory_space<vmem>>, vector<1x64x32xbf16>
    %141 = vector.shape_cast %140 : vector<1x64x32xbf16> to vector<64x32xbf16>
    %cst_49 = arith.constant dense<0.000000e+00> : vector<16x32xf32>
    %142 = tpu.matmul %139, %141, %cst_49 {dimension_numbers = #tpu.dot_dimension_numbers<[1], [0], [0], [1], [0, 0, 1, 1], [], []>} : vector<16x64xbf16>, vector<64x32xbf16>, vector<16x32xf32> -> vector<16x32xf32>
    %143 = vector.broadcast %31 : vector<1x32xf32> to vector<16x32xf32>
    %144 = arith.addf %142, %143 : vector<16x32xf32>
    %145 = arith.addf %144, %117 : vector<16x32xf32>
    %cst_50 = arith.constant dense<0.000000e+00> : vector<16xf32>
    %146 = vector.multi_reduction <add>, %145, %cst_50 [1] : vector<16x32xf32> to vector<16xf32>
    %147 = vector.shape_cast %146 : vector<16xf32> to vector<16x1xf32>
    %cst_51 = arith.constant 3.200000e+01 : f32
    %148 = vector.broadcast %cst_51 : f32 to vector<16x1xf32>
    %149 = arith.divf %147, %148 : vector<16x1xf32>
    %150 = vector.broadcast %149 : vector<16x1xf32> to vector<16x32xf32>
    %151 = arith.subf %145, %150 : vector<16x32xf32>
    %152 = arith.mulf %151, %151 : vector<16x32xf32>
    %cst_52 = arith.constant dense<0.000000e+00> : vector<16xf32>
    %153 = vector.multi_reduction <add>, %152, %cst_52 [1] : vector<16x32xf32> to vector<16xf32>
    %154 = vector.shape_cast %153 : vector<16xf32> to vector<16x1xf32>
    %cst_53 = arith.constant 3.200000e+01 : f32
    %155 = vector.broadcast %cst_53 : f32 to vector<16x1xf32>
    %156 = arith.divf %154, %155 : vector<16x1xf32>
    %157 = vector.broadcast %149 : vector<16x1xf32> to vector<16x32xf32>
    %158 = arith.subf %145, %157 : vector<16x32xf32>
    %cst_54 = arith.constant 9.99999996E-13 : f32
    %159 = vector.broadcast %cst_54 : f32 to vector<16x1xf32>
    %160 = arith.addf %156, %159 : vector<16x1xf32>
    %161 = math.rsqrt %160 : vector<16x1xf32>
    %162 = vector.broadcast %161 : vector<16x1xf32> to vector<16x32xf32>
    %163 = arith.mulf %158, %162 : vector<16x32xf32>
    %164 = vector.broadcast %32 : vector<1x32xf32> to vector<16x32xf32>
    %165 = arith.mulf %163, %164 : vector<16x32xf32>
    %166 = vector.broadcast %33 : vector<1x32xf32> to vector<16x32xf32>
    %167 = arith.addf %165, %166 : vector<16x32xf32>
    %c1_55 = arith.constant 1 : index
    %c0_56 = arith.constant 0 : index
    %c0_57 = arith.constant 0 : index
    %168 = vector.load %arg8[%c1_55, %c0_56, %c0_57] : memref<2x6x32xf32, #tpu.memory_space<vmem>>, vector<1x6x32xf32>
    %169 = vector.shape_cast %168 : vector<1x6x32xf32> to vector<6x32xf32>
    %170 = vector.extract_strided_slice %169 {offsets = [0, 0], sizes = [1, 32], strides = [1, 1]} : vector<6x32xf32> to vector<1x32xf32>
    %171 = vector.extract_strided_slice %169 {offsets = [1, 0], sizes = [1, 32], strides = [1, 1]} : vector<6x32xf32> to vector<1x32xf32>
    %172 = vector.extract_strided_slice %169 {offsets = [2, 0], sizes = [1, 32], strides = [1, 1]} : vector<6x32xf32> to vector<1x32xf32>
    %173 = vector.extract_strided_slice %169 {offsets = [3, 0], sizes = [1, 32], strides = [1, 1]} : vector<6x32xf32> to vector<1x32xf32>
    %174 = vector.extract_strided_slice %169 {offsets = [4, 0], sizes = [1, 32], strides = [1, 1]} : vector<6x32xf32> to vector<1x32xf32>
    %175 = vector.extract_strided_slice %169 {offsets = [5, 0], sizes = [1, 32], strides = [1, 1]} : vector<6x32xf32> to vector<1x32xf32>
    %176 = arith.truncf %167 : vector<16x32xf32> to vector<16x32xbf16>
    %c1_58 = arith.constant 1 : index
    %c0_59 = arith.constant 0 : index
    %c0_60 = arith.constant 0 : index
    %177 = vector.load %arg2[%c1_58, %c0_59, %c0_60] : memref<2x32x96xbf16, #tpu.memory_space<vmem>>, vector<1x32x96xbf16>
    %178 = vector.shape_cast %177 : vector<1x32x96xbf16> to vector<32x96xbf16>
    %cst_61 = arith.constant dense<0.000000e+00> : vector<16x96xf32>
    %179 = tpu.matmul %176, %178, %cst_61 {dimension_numbers = #tpu.dot_dimension_numbers<[1], [0], [0], [1], [0, 0, 1, 1], [], []>} : vector<16x32xbf16>, vector<32x96xbf16>, vector<16x96xf32> -> vector<16x96xf32>
    %c1_62 = arith.constant 1 : index
    %c0_63 = arith.constant 0 : index
    %c0_64 = arith.constant 0 : index
    %180 = vector.load %arg3[%c1_62, %c0_63, %c0_64] : memref<2x1x96xf32, #tpu.memory_space<vmem>>, vector<1x1x96xf32>
    %181 = vector.shape_cast %180 : vector<1x1x96xf32> to vector<1x96xf32>
    %182 = vector.broadcast %181 : vector<1x96xf32> to vector<16x96xf32>
    %183 = arith.addf %179, %182 : vector<16x96xf32>
    %184 = vector.extract_strided_slice %183 {offsets = [0, 0], sizes = [16, 8], strides = [1, 1]} : vector<16x96xf32> to vector<16x8xf32>
    %185 = vector.extract_strided_slice %183 {offsets = [0, 8], sizes = [16, 8], strides = [1, 1]} : vector<16x96xf32> to vector<16x8xf32>
    %186 = vector.extract_strided_slice %183 {offsets = [0, 16], sizes = [16, 8], strides = [1, 1]} : vector<16x96xf32> to vector<16x8xf32>
    %187 = vector.extract_strided_slice %183 {offsets = [0, 24], sizes = [16, 8], strides = [1, 1]} : vector<16x96xf32> to vector<16x8xf32>
    %188 = tpu.concatenate %184, %185, %186, %187 in 0 : vector<16x8xf32>, vector<16x8xf32>, vector<16x8xf32>, vector<16x8xf32> -> vector<64x8xf32>
    %189 = vector.shape_cast %188 : vector<64x8xf32> to vector<8x8x8xf32>
    %190 = arith.truncf %189 : vector<8x8x8xf32> to vector<8x8x8xbf16>
    %191 = vector.extract_strided_slice %183 {offsets = [0, 32], sizes = [16, 8], strides = [1, 1]} : vector<16x96xf32> to vector<16x8xf32>
    %192 = vector.extract_strided_slice %183 {offsets = [0, 40], sizes = [16, 8], strides = [1, 1]} : vector<16x96xf32> to vector<16x8xf32>
    %193 = vector.extract_strided_slice %183 {offsets = [0, 48], sizes = [16, 8], strides = [1, 1]} : vector<16x96xf32> to vector<16x8xf32>
    %194 = vector.extract_strided_slice %183 {offsets = [0, 56], sizes = [16, 8], strides = [1, 1]} : vector<16x96xf32> to vector<16x8xf32>
    %195 = tpu.concatenate %191, %192, %193, %194 in 0 : vector<16x8xf32>, vector<16x8xf32>, vector<16x8xf32>, vector<16x8xf32> -> vector<64x8xf32>
    %196 = vector.shape_cast %195 : vector<64x8xf32> to vector<8x8x8xf32>
    %197 = arith.truncf %196 : vector<8x8x8xf32> to vector<8x8x8xbf16>
    %198 = vector.extract_strided_slice %183 {offsets = [0, 64], sizes = [16, 8], strides = [1, 1]} : vector<16x96xf32> to vector<16x8xf32>
    %199 = vector.extract_strided_slice %183 {offsets = [0, 72], sizes = [16, 8], strides = [1, 1]} : vector<16x96xf32> to vector<16x8xf32>
    %200 = vector.extract_strided_slice %183 {offsets = [0, 80], sizes = [16, 8], strides = [1, 1]} : vector<16x96xf32> to vector<16x8xf32>
    %201 = vector.extract_strided_slice %183 {offsets = [0, 88], sizes = [16, 8], strides = [1, 1]} : vector<16x96xf32> to vector<16x8xf32>
    %202 = tpu.concatenate %198, %199, %200, %201 in 0 : vector<16x8xf32>, vector<16x8xf32>, vector<16x8xf32>, vector<16x8xf32> -> vector<64x8xf32>
    %203 = vector.shape_cast %202 : vector<64x8xf32> to vector<8x8x8xf32>
    %204 = arith.truncf %203 : vector<8x8x8xf32> to vector<8x8x8xbf16>
    "tpu.trace_start"() <{level = 10 : i32, message = "bqd,bkd->bqk"}> : () -> ()
    %cst_65 = arith.constant dense<0.000000e+00> : vector<8x8x8xf32>
    %205 = tpu.matmul %190, %197, %cst_65 {dimension_numbers = #tpu.dot_dimension_numbers<[2], [2], [1], [1], [0, 0, 0, 1, 1, 1], [0], [0]>} : vector<8x8x8xbf16>, vector<8x8x8xbf16>, vector<8x8x8xf32> -> vector<8x8x8xf32>
    "tpu.trace_stop"() : () -> ()
    %cst_66 = arith.constant 0.353553385 : f32
    %206 = vector.broadcast %cst_66 : f32 to vector<8x8x8xf32>
    %207 = arith.mulf %205, %206 : vector<8x8x8xf32>
    %208 = vector.broadcast %25 : vector<8x1x8xf32> to vector<8x8x8xf32>
    %209 = arith.addf %207, %208 : vector<8x8x8xf32>
    %cst_67 = arith.constant dense<0xFF800000> : vector<8x8xf32>
    %210 = vector.multi_reduction <maximumf>, %209, %cst_67 [2] : vector<8x8x8xf32> to vector<8x8xf32>
    %211 = vector.shape_cast %210 : vector<8x8xf32> to vector<8x8x1xf32>
    %212 = vector.broadcast %211 : vector<8x8x1xf32> to vector<8x8x8xf32>
    %213 = arith.subf %209, %212 : vector<8x8x8xf32>
    %214 = math.exp %213 : vector<8x8x8xf32>
    %cst_68 = arith.constant dense<0.000000e+00> : vector<8x8xf32>
    %215 = vector.multi_reduction <add>, %214, %cst_68 [2] : vector<8x8x8xf32> to vector<8x8xf32>
    %216 = vector.shape_cast %215 : vector<8x8xf32> to vector<8x8x1xf32>
    %217 = tpu.reciprocal %216 {approx = true} : vector<8x8x1xf32> -> vector<8x8x1xf32>
    %218 = vector.broadcast %217 : vector<8x8x1xf32> to vector<8x8x8xf32>
    %219 = arith.mulf %214, %218 : vector<8x8x8xf32>
    %220 = arith.truncf %219 : vector<8x8x8xf32> to vector<8x8x8xbf16>
    "tpu.trace_start"() <{level = 10 : i32, message = "bqk,bkd->bqd"}> : () -> ()
    %cst_69 = arith.constant dense<0.000000e+00> : vector<8x8x8xf32>
    %221 = tpu.matmul %220, %204, %cst_69 {dimension_numbers = #tpu.dot_dimension_numbers<[2], [1], [1], [2], [0, 0, 0, 1, 1, 2], [0], [0]>} : vector<8x8x8xbf16>, vector<8x8x8xbf16>, vector<8x8x8xf32> -> vector<8x8x8xf32>
    "tpu.trace_stop"() : () -> ()
    %222 = vector.extract_strided_slice %221 {offsets = [0, 0, 0], sizes = [2, 8, 8], strides = [1, 1, 1]} : vector<8x8x8xf32> to vector<2x8x8xf32>
    %223 = vector.shape_cast %222 : vector<2x8x8xf32> to vector<16x8xf32>
    %224 = vector.extract_strided_slice %221 {offsets = [2, 0, 0], sizes = [2, 8, 8], strides = [1, 1, 1]} : vector<8x8x8xf32> to vector<2x8x8xf32>
    %225 = vector.shape_cast %224 : vector<2x8x8xf32> to vector<16x8xf32>
    %226 = vector.extract_strided_slice %221 {offsets = [4, 0, 0], sizes = [2, 8, 8], strides = [1, 1, 1]} : vector<8x8x8xf32> to vector<2x8x8xf32>
    %227 = vector.shape_cast %226 : vector<2x8x8xf32> to vector<16x8xf32>
    %228 = vector.extract_strided_slice %221 {offsets = [6, 0, 0], sizes = [2, 8, 8], strides = [1, 1, 1]} : vector<8x8x8xf32> to vector<2x8x8xf32>
    %229 = vector.shape_cast %228 : vector<2x8x8xf32> to vector<16x8xf32>
    %230 = tpu.concatenate %223, %225, %227, %229 in 1 : vector<16x8xf32>, vector<16x8xf32>, vector<16x8xf32>, vector<16x8xf32> -> vector<16x32xf32>
    %231 = arith.truncf %230 : vector<16x32xf32> to vector<16x32xbf16>
    %c1_70 = arith.constant 1 : index
    %c0_71 = arith.constant 0 : index
    %c0_72 = arith.constant 0 : index
    %232 = vector.load %arg4[%c1_70, %c0_71, %c0_72] : memref<2x32x32xbf16, #tpu.memory_space<vmem>>, vector<1x32x32xbf16>
    %233 = vector.shape_cast %232 : vector<1x32x32xbf16> to vector<32x32xbf16>
    %cst_73 = arith.constant dense<0.000000e+00> : vector<16x32xf32>
    %234 = tpu.matmul %231, %233, %cst_73 {dimension_numbers = #tpu.dot_dimension_numbers<[1], [0], [0], [1], [0, 0, 1, 1], [], []>} : vector<16x32xbf16>, vector<32x32xbf16>, vector<16x32xf32> -> vector<16x32xf32>
    %235 = vector.broadcast %170 : vector<1x32xf32> to vector<16x32xf32>
    %236 = arith.addf %234, %235 : vector<16x32xf32>
    %237 = arith.addf %236, %167 : vector<16x32xf32>
    %cst_74 = arith.constant dense<0.000000e+00> : vector<16xf32>
    %238 = vector.multi_reduction <add>, %237, %cst_74 [1] : vector<16x32xf32> to vector<16xf32>
    %239 = vector.shape_cast %238 : vector<16xf32> to vector<16x1xf32>
    %cst_75 = arith.constant 3.200000e+01 : f32
    %240 = vector.broadcast %cst_75 : f32 to vector<16x1xf32>
    %241 = arith.divf %239, %240 : vector<16x1xf32>
    %242 = vector.broadcast %241 : vector<16x1xf32> to vector<16x32xf32>
    %243 = arith.subf %237, %242 : vector<16x32xf32>
    %244 = arith.mulf %243, %243 : vector<16x32xf32>
    %cst_76 = arith.constant dense<0.000000e+00> : vector<16xf32>
    %245 = vector.multi_reduction <add>, %244, %cst_76 [1] : vector<16x32xf32> to vector<16xf32>
    %246 = vector.shape_cast %245 : vector<16xf32> to vector<16x1xf32>
    %cst_77 = arith.constant 3.200000e+01 : f32
    %247 = vector.broadcast %cst_77 : f32 to vector<16x1xf32>
    %248 = arith.divf %246, %247 : vector<16x1xf32>
    %249 = vector.broadcast %241 : vector<16x1xf32> to vector<16x32xf32>
    %250 = arith.subf %237, %249 : vector<16x32xf32>
    %cst_78 = arith.constant 9.99999996E-13 : f32
    %251 = vector.broadcast %cst_78 : f32 to vector<16x1xf32>
    %252 = arith.addf %248, %251 : vector<16x1xf32>
    %253 = math.rsqrt %252 : vector<16x1xf32>
    %254 = vector.broadcast %253 : vector<16x1xf32> to vector<16x32xf32>
    %255 = arith.mulf %250, %254 : vector<16x32xf32>
    %256 = vector.broadcast %171 : vector<1x32xf32> to vector<16x32xf32>
    %257 = arith.mulf %255, %256 : vector<16x32xf32>
    %258 = vector.broadcast %172 : vector<1x32xf32> to vector<16x32xf32>
    %259 = arith.addf %257, %258 : vector<16x32xf32>
    %260 = arith.truncf %259 : vector<16x32xf32> to vector<16x32xbf16>
    %c1_79 = arith.constant 1 : index
    %c0_80 = arith.constant 0 : index
    %c0_81 = arith.constant 0 : index
    %261 = vector.load %arg5[%c1_79, %c0_80, %c0_81] : memref<2x32x64xbf16, #tpu.memory_space<vmem>>, vector<1x32x64xbf16>
    %262 = vector.shape_cast %261 : vector<1x32x64xbf16> to vector<32x64xbf16>
    %cst_82 = arith.constant dense<0.000000e+00> : vector<16x64xf32>
    %263 = tpu.matmul %260, %262, %cst_82 {dimension_numbers = #tpu.dot_dimension_numbers<[1], [0], [0], [1], [0, 0, 1, 1], [], []>} : vector<16x32xbf16>, vector<32x64xbf16>, vector<16x64xf32> -> vector<16x64xf32>
    %c1_83 = arith.constant 1 : index
    %c0_84 = arith.constant 0 : index
    %c0_85 = arith.constant 0 : index
    %264 = vector.load %arg6[%c1_83, %c0_84, %c0_85] : memref<2x1x64xf32, #tpu.memory_space<vmem>>, vector<1x1x64xf32>
    %265 = vector.shape_cast %264 : vector<1x1x64xf32> to vector<1x64xf32>
    %266 = vector.broadcast %265 : vector<1x64xf32> to vector<16x64xf32>
    %267 = arith.addf %263, %266 : vector<16x64xf32>
    %cst_86 = arith.constant 5.000000e-01 : f32
    %268 = vector.broadcast %cst_86 : f32 to vector<16x64xf32>
    %269 = arith.mulf %268, %267 : vector<16x64xf32>
    %cst_87 = arith.constant 4.471500e-02 : f32
    %270 = vector.broadcast %cst_87 : f32 to vector<16x64xf32>
    %271 = arith.mulf %270, %267 : vector<16x64xf32>
    %272 = arith.mulf %271, %267 : vector<16x64xf32>
    %273 = arith.mulf %272, %267 : vector<16x64xf32>
    %274 = arith.addf %267, %273 : vector<16x64xf32>
    %cst_88 = arith.constant 0.797884583 : f32
    %275 = vector.broadcast %cst_88 : f32 to vector<16x64xf32>
    %276 = arith.mulf %275, %274 : vector<16x64xf32>
    %277 = math.tanh %276 : vector<16x64xf32>
    %cst_89 = arith.constant 1.000000e+00 : f32
    %278 = vector.broadcast %cst_89 : f32 to vector<16x64xf32>
    %279 = arith.addf %278, %277 : vector<16x64xf32>
    %280 = arith.mulf %269, %279 : vector<16x64xf32>
    %281 = arith.truncf %280 : vector<16x64xf32> to vector<16x64xbf16>
    %c1_90 = arith.constant 1 : index
    %c0_91 = arith.constant 0 : index
    %c0_92 = arith.constant 0 : index
    %282 = vector.load %arg7[%c1_90, %c0_91, %c0_92] : memref<2x64x32xbf16, #tpu.memory_space<vmem>>, vector<1x64x32xbf16>
    %283 = vector.shape_cast %282 : vector<1x64x32xbf16> to vector<64x32xbf16>
    %cst_93 = arith.constant dense<0.000000e+00> : vector<16x32xf32>
    %284 = tpu.matmul %281, %283, %cst_93 {dimension_numbers = #tpu.dot_dimension_numbers<[1], [0], [0], [1], [0, 0, 1, 1], [], []>} : vector<16x64xbf16>, vector<64x32xbf16>, vector<16x32xf32> -> vector<16x32xf32>
    %285 = vector.broadcast %173 : vector<1x32xf32> to vector<16x32xf32>
    %286 = arith.addf %284, %285 : vector<16x32xf32>
    %287 = arith.addf %286, %259 : vector<16x32xf32>
    %cst_94 = arith.constant dense<0.000000e+00> : vector<16xf32>
    %288 = vector.multi_reduction <add>, %287, %cst_94 [1] : vector<16x32xf32> to vector<16xf32>
    %289 = vector.shape_cast %288 : vector<16xf32> to vector<16x1xf32>
    %cst_95 = arith.constant 3.200000e+01 : f32
    %290 = vector.broadcast %cst_95 : f32 to vector<16x1xf32>
    %291 = arith.divf %289, %290 : vector<16x1xf32>
    %292 = vector.broadcast %291 : vector<16x1xf32> to vector<16x32xf32>
    %293 = arith.subf %287, %292 : vector<16x32xf32>
    %294 = arith.mulf %293, %293 : vector<16x32xf32>
    %cst_96 = arith.constant dense<0.000000e+00> : vector<16xf32>
    %295 = vector.multi_reduction <add>, %294, %cst_96 [1] : vector<16x32xf32> to vector<16xf32>
    %296 = vector.shape_cast %295 : vector<16xf32> to vector<16x1xf32>
    %cst_97 = arith.constant 3.200000e+01 : f32
    %297 = vector.broadcast %cst_97 : f32 to vector<16x1xf32>
    %298 = arith.divf %296, %297 : vector<16x1xf32>
    %299 = vector.broadcast %291 : vector<16x1xf32> to vector<16x32xf32>
    %300 = arith.subf %287, %299 : vector<16x32xf32>
    %cst_98 = arith.constant 9.99999996E-13 : f32
    %301 = vector.broadcast %cst_98 : f32 to vector<16x1xf32>
    %302 = arith.addf %298, %301 : vector<16x1xf32>
    %303 = math.rsqrt %302 : vector<16x1xf32>
    %304 = vector.broadcast %303 : vector<16x1xf32> to vector<16x32xf32>
    %305 = arith.mulf %300, %304 : vector<16x32xf32>
    %306 = vector.broadcast %174 : vector<1x32xf32> to vector<16x32xf32>
    %307 = arith.mulf %305, %306 : vector<16x32xf32>
    %308 = vector.broadcast %175 : vector<1x32xf32> to vector<16x32xf32>
    %309 = arith.addf %307, %308 : vector<16x32xf32>
    %310 = vector.extract_strided_slice %309 {offsets = [0, 0], sizes = [1, 32], strides = [1, 1]} : vector<16x32xf32> to vector<1x32xf32>
    %311 = vector.extract_strided_slice %309 {offsets = [8, 0], sizes = [1, 32], strides = [1, 1]} : vector<16x32xf32> to vector<1x32xf32>
    %312 = tpu.concatenate %310, %311 in 0 : vector<1x32xf32>, vector<1x32xf32> -> vector<2x32xf32>
    %313 = arith.truncf %312 : vector<2x32xf32> to vector<2x32xbf16>
    %c0_99 = arith.constant 0 : index
    %c0_100 = arith.constant 0 : index
    %314 = vector.load %arg10[%c0_99, %c0_100] : memref<32x32xbf16, #tpu.memory_space<vmem>>, vector<32x32xbf16>
    %cst_101 = arith.constant dense<0.000000e+00> : vector<2x32xf32>
    %315 = tpu.matmul %313, %314, %cst_101 {dimension_numbers = #tpu.dot_dimension_numbers<[1], [0], [0], [1], [0, 0, 1, 1], [], []>} : vector<2x32xbf16>, vector<32x32xbf16>, vector<2x32xf32> -> vector<2x32xf32>
    %c0_102 = arith.constant 0 : index
    %c0_103 = arith.constant 0 : index
    %316 = vector.load %arg11[%c0_102, %c0_103] : memref<1x32xf32, #tpu.memory_space<vmem>>, vector<1x32xf32>
    %317 = vector.broadcast %316 : vector<1x32xf32> to vector<2x32xf32>
    %318 = arith.addf %315, %317 : vector<2x32xf32>
    %319 = math.tanh %318 : vector<2x32xf32>
    %320 = arith.truncf %319 : vector<2x32xf32> to vector<2x32xbf16>
    %c0_104 = arith.constant 0 : index
    %c0_105 = arith.constant 0 : index
    %321 = vector.load %arg12[%c0_104, %c0_105] : memref<32x128xbf16, #tpu.memory_space<vmem>>, vector<32x128xbf16>
    %cst_106 = arith.constant dense<0.000000e+00> : vector<2x128xf32>
    %322 = tpu.matmul %320, %321, %cst_106 {dimension_numbers = #tpu.dot_dimension_numbers<[1], [0], [0], [1], [0, 0, 1, 1], [], []>} : vector<2x32xbf16>, vector<32x128xbf16>, vector<2x128xf32> -> vector<2x128xf32>
    %c0_107 = arith.constant 0 : index
    %c0_108 = arith.constant 0 : index
    %323 = vector.load %arg13[%c0_107, %c0_108] : memref<1x128xf32, #tpu.memory_space<vmem>>, vector<1x128xf32>
    %324 = vector.broadcast %323 : vector<1x128xf32> to vector<2x128xf32>
    %325 = arith.addf %322, %324 : vector<2x128xf32>
    %c0_109 = arith.constant 0 : index
    %c0_110 = arith.constant 0 : index
    %326 = vector.load %arg14[%c0_109, %c0_110] : memref<2x128xf32, #tpu.memory_space<vmem>>, vector<2x128xf32>
    tpu.vector_store %arg14[%c0_109, %c0_110], %325 {strides = array<i32>} : memref<2x128xf32, #tpu.memory_space<vmem>>, vector<2x128xf32>,
    return
  }
}

</mosaic_0001>

<bundles_post_ra>
// kernel: _bert_forward_impl.1
= control target key start
LH: loop header
LB: loop body
LE: loop exit
PB: predicated region body
PF: predicated region fallthrough
CT: control target
= control target key end

     0   :  { %vm53_vm0 = vcmask 261120   ;;  %s4484_s0 = inlined_call_operand.vmem [shape: f32[16,32], index: 0, kind: input, shape index: {}]   ;;  %s4485_s1 = inlined_call_operand.vmem [shape: f32[8,1,8], index: 1, kind: input, shape index: {}]   ;;  %s4486_s2 = inlined_call_operand.vmem [shape: bf16[2,32,96], index: 2, kind: input, shape index: {}]   ;;  %s4487_s3 = inlined_call_operand.vmem [shape: f32[2,1,96], index: 3, kind: input, shape index: {}]   ;;  %s4488_s4 = inlined_call_operand.vmem [shape: bf16[2,32,32], index: 4, kind: input, shape index: {}]   ;;  %s4489_s5 = inlined_call_operand.vmem [shape: bf16[2,32,64], index: 5, kind: input, shape index: {}]   ;;  %s4490_s6 = inlined_call_operand.vmem [shape: f32[2,1,64], index: 6, kind: input, shape index: {}]   ;;  %s4491_s7 = inlined_call_operand.vmem [shape: bf16[2,64,32], index: 7, kind: input, shape index: {}]   ;;  %s4492_s8 = inlined_call_operand.vmem [shape: f32[2,6,32], index: 8, kind: input, shape index: {}]   ;;  %s4493_s9 = inlined_call_operand.vmem [shape: f32[2,32], index: 9, kind: input, shape index: {}]   ;;  %s4494_s10 = inlined_call_operand.vmem [shape: bf16[32,32], index: 10, kind: input, shape index: {}]   ;;  %s4495_s11 = inlined_call_operand.vmem [shape: f32[1,32], index: 11, kind: input, shape index: {}]   ;;  %s4496_s12 = inlined_call_operand.vmem [shape: bf16[32,128], index: 12, kind: input, shape index: {}]   ;;  %s4497_s13 = inlined_call_operand.vmem [shape: f32[1,128], index: 13, kind: input, shape index: {}]   ;;  %s4498_s14 = inlined_call_operand.hbm [shape: f32[2,128], index: 14, kind: output, shape index: {}]  }
   0x1   :  { %v49_v0 = vld [vmem:[%s4484_s0] sm:$0xff]  ;;  %v50_v1 = vld [vmem:[%s4484_s0 + $0x8] sm:$0xff] }
   0x2   :  { %v54_v2 = vsel %vm53_vm0, %v49_v0, 0.0  ;;  %v57_v3 = vsel %vm53_vm0, %v50_v1, 0.0 }
   0x3   :  { %55 = vadd.xlane.f32.xlu0 %v54_v2 }
   0x7   :  { %58 = vadd.xlane.f32.xlu0 %v57_v3 }
   0x8   :  { %19 = vsyncpa [#allocation3], 0  ;;  %v3524_v14 = vld [vmem:[%s4486_s2] sm:$0xff]   ;;  %v3674_v15 = vmov 0.0   ;;  %v3525_v16 = vld [vmem:[%s4486_s2 + $0x8] sm:$0xff]   ;;  %vm3675_vm1 = vmmov 0  }
   0x9   :  { %3173 = vmatprep.subr.bf16.mxu0 %v3674_v15  ;;  %3181 = vmatprep.subr.bf16.mxu1 %v3674_v15  ;;  %v2970_v25 = vld [vmem:[%s4493_s9] ss:$0 sm:$0xff]  ;;  %v2971_v29 = vld [vmem:[%s4493_s9 + $0x1] ss:$0 sm:$0xff]  ;;  %s3676_s9 = smov 112   ;;  %s3677_s26 = smov 120  }
   0xa   :  { %3174 = vmatpush3.bf16.msra.mxu0 %v3524_v14  ;;  %3177 = vmatprep.mubr.msk.bf16.mxu0 %vm3675_vm1, %v3674_v15  ;;  %v2972_v34 = vld [vmem:[%s4487_s3] ss:$0 sm:$0xff]  ;;  %s3678_s27 = smov 104   ;;  %s3679_s28 = smov 96   ;;  %vm201_vm2 = vcmask 64512   ;;  %vm756_vm3 = vcmask 1043456  }
   0xb   :  { %3175 = vmatprep.subr.bf16.mxu0 %v3674_v15  ;;  %3183 = vmatprep.mubr.msk.bf16.mxu1 %vm3675_vm1, %v3674_v15  ;;  %s3680_s29 = smov 64   ;;  %v2985_v14 = vld [vmem:[%s4485_s1 + $0x1] ss:$0 sm:$0xff]  ;;  %s3681_s0 = smov 8   ;;  %vm1162_vm4 = vcmask 130048   ;;  %vm1165_vm5 = vcmask 195584  }
   0xc   :  { %s3682_s21 = smov 16   ;;  %s3683_s22 = smov 24   ;;  %vm1396_vm6 = vcmask 523264   ;;  %vm2818_vm7 = vcmask 1040384  }
   0xe   :  { %3176 = vmatpush3.bf16.msra.mxu0 %v3525_v16 }
   0xf   :  { %3187 = vmatprep.subr.bf16.mxu0 %v3674_v15 }
  0x90   :  { %v56_v4 = vpop.xlane.xlu0 %55 }
  0x91   :  { %v61_v5 = vmul.f32 0.03125, %v56_v4 }
  0x93   :  { %v63_v6 = vsub.f32 %v49_v0, %v61_v5 }
  0x94   :  { %v59_v7 = vpop.xlane.xlu0 %58 }
  0x95   :  { %v62_v8 = vmul.f32 0.03125, %v59_v7  ;;  %v65_v9 = vmul.f32 %v63_v6, %v63_v6 }
  0x97   :  { %v64_v10 = vsub.f32 %v50_v1, %v62_v8  ;;  %v67_v11 = vsel %vm53_vm0, %v65_v9, 0.0 }
  0x98   :  { %68 = vadd.xlane.f32.xlu1 %v67_v11 }
  0x99   :  { %v66_v12 = vmul.f32 %v64_v10, %v64_v10 }
  0x9b   :  { %v70_v13 = vsel %vm53_vm0, %v66_v12, 0.0 }
  0x9c   :  { %71 = vadd.xlane.f32.xlu1 %v70_v13 }
 0x125   :  { %v69_v17 = vpop.xlane.xlu1 %68 }
 0x126   :  { %v73_v18 = vmul.f32 0.03125, %v69_v17 }
 0x128   :  { %v75_v19 = vadd.f32 1e-12, %v73_v18 }
 0x129   :  { %v72_v20 = vpop.xlane.xlu1 %71 }
 0x12a   :  { %3548 = vrsqrt.f32 %v75_v19  ;;  %v74_v21 = vmul.f32 0.03125, %v72_v20 }
 0x12c   :  { %v76_v22 = vadd.f32 1e-12, %v74_v21 }
 0x12e   :  { %3550 = vrsqrt.f32 %v76_v22  ;;  %v2984_v22 = vld [vmem:[%s4485_s1] ss:$0 sm:$0xff] }
 0x134   :  { %v3549_v23 = vpop.eup %3548 }
 0x135   :  { %v79_v24 = vmul.f32 %v3549_v23, %v63_v6 }
 0x137   :  { %v85_v28 = vmul.f32 %v2970_v25, %v79_v24 }
 0x138   :  { %v3551_v26 = vpop.eup %3550 }
 0x139   :  { %v80_v27 = vmul.f32 %v3551_v26, %v64_v10  ;;  %v3790_v31 = vadd.f32 %v2971_v29, %v85_v28 }
 0x13b   :  { %v86_v30 = vmul.f32 %v2970_v25, %v80_v27 }
 0x13d   :  { %v3792_v32 = vadd.f32 %v2971_v29, %v86_v30 }
 0x13f   :  { %v102_v33 = vpack.c.bf16 %v3792_v32, %v3790_v31 }
 0x141   :  { %3178 = vmatmul.mubr.msk.bf16.vlgmr.msra.gmra.mrb[0].mxu0 %vm53_vm0, %v102_v33 }
 0x142   :  { %3189 = vmatprep.mubr.msk.bf16.mxu0 %vm3675_vm1, %v3674_v15 }
 0x214   :  { %v163_v35 = vpop.f32.mrb[0].mxu0 }
 0x215   :  { %v3179_v36 = vpop.f32.mrb[1].mxu0  ;;  %v164_v38 = vadd.f32 %v2972_v34, %v163_v35  ;;  %v2987_v35 = vld [vmem:[%s4485_s1 + $0x3] ss:$0 sm:$0xff] }
 0x216   :  { %v166_v37 = vpop.f32.mrb[2].mxu0 }
 0x217   :  { %v167_v39 = vadd.f32 %v2972_v34, %v166_v37  ;;  %v3180_v40 = vpop.f32.mrb[3].mxu0  ;;  %v190_v43 = vpack.c.bf16 %v164_v38, %v164_v38  ;;  %v2986_v34 = vld [vmem:[%s4485_s1 + $0x2] ss:$0 sm:$0xff] }
 0x219   :  { %v3469_v41 = vpack.i.bf16 %v167_v39, %v164_v38  ;;  %v3804_v42 = vpack.c.bf16 %v167_v39, %v167_v39 }
 0x21b   :  { %3470 = vrot.lane.b32.xlu1 %v3469_v41, %s3676_s9  ;;  %3465 = vrot.lane.b32.xlu0 %v3469_v41, %s3677_s26 }
 0x21f   :  { %3475 = vrot.lane.b32.xlu1 %v3469_v41, %s3678_s27  ;;  %249 = vrot.lane.b32.xlu0 %v3804_v42, %s3679_s28 }
 0x223   :  { %199 = vrot.lane.b32.xlu1 %v190_v43, %s3679_s28 }
 0x28d   :  { %v3471_v44 = vpop.permute.xlu1 %3470  ;;  %v3466_v45 = vpop.permute.xlu0 %3465 }
 0x28e   :  { %v3468_v46 = vunpack.i.h.bf16 %v3466_v45  ;;  %v3467_v47 = vunpack.i.l.bf16 %v3466_v45  ;;  %v3473_v48 = vunpack.i.h.bf16 %v3471_v44  ;;  %v3472_v49 = vunpack.i.l.bf16 %v3471_v44 }
 0x290   :  { %v3810_v50 = vpack.c.bf16 %v3468_v46, %v3468_v46  ;;  %v3812_v51 = vpack.c.bf16 %v3467_v47, %v3467_v47  ;;  %v3819_v55 = vpack.c.bf16 %v3473_v48, %v3473_v48  ;;  %v3821_v56 = vpack.c.bf16 %v3472_v49, %v3472_v49  ;;  %v2988_v48 = vld [vmem:[%s4485_s1 + $0x4] ss:$0 sm:$0xff] }
 0x291   :  { %v3476_v52 = vpop.permute.xlu1 %3475  ;;  %v250_v53 = vpop.permute.xlu0 %249 }
 0x292   :  { %v255_v54 = vsel %vm201_vm2, %v250_v53, 0  ;;  %298 = vrot.lane.b32.xlu1 %v3812_v51, %s3679_s28  ;;  %347 = vrot.lane.b32.xlu0 %v3810_v50, %s3679_s28  ;;  %v3478_v57 = vunpack.i.h.bf16 %v3476_v52  ;;  %v3477_v58 = vunpack.i.l.bf16 %v3476_v52 }
 0x293   :  { %3188 = vmatpush3.bf16.xpose.msra.mxu0 %v255_v54  ;;  %v2989_v54 = vld [vmem:[%s4485_s1 + $0x5] ss:$0 sm:$0xff] }
 0x294   :  { %3199 = vmatprep.subr.bf16.mxu0 %v3674_v15  ;;  %v3829_v61 = vpack.c.bf16 %v3478_v57, %v3478_v57  ;;  %v3831_v62 = vpack.c.bf16 %v3477_v58, %v3477_v58 }
 0x295   :  { %v200_v59 = vpop.permute.xlu1 %199 }
 0x296   :  { %396 = vrot.lane.b32.xlu1 %v3821_v56, %s3679_s28  ;;  %445 = vrot.lane.b32.xlu0 %v3819_v55, %s3679_s28  ;;  %v206_v60 = vsel %vm201_vm2, %v200_v59, 0 }
 0x297   :  { %3182 = vmatpush3.bf16.xpose.msra.mxu1 %v206_v60 }
 0x298   :  { %3193 = vmatprep.subr.bf16.mxu1 %v3674_v15 }
 0x29a   :  { %494 = vrot.lane.b32.xlu1 %v3831_v62, %s3679_s28  ;;  %543 = vrot.lane.b32.xlu0 %v3829_v61, %s3679_s28 }
 0x29b   :  { %3190 = vmatmul.mubr.msk.bf16.vlgmr.msra.gmra.mrb[4].mxu0 %vm201_vm2, %v3804_v42 }
 0x29c   :  { %3201 = vmatprep.mubr.msk.bf16.mxu0 %vm3675_vm1, %v3674_v15 }
 0x29e   :  { %3184 = vmatmul.mubr.msk.bf16.vlgmr.msra.gmra.mrb[0].mxu1 %vm201_vm2, %v190_v43  ;;  %751 = vrot.lane.b32.xlu1 %v190_v43, %s3680_s29 }
 0x29f   :  { %3195 = vmatprep.mubr.msk.bf16.mxu1 %vm3675_vm1, %v3674_v15 }
 0x304   :  { %v299_v63 = vpop.permute.xlu1 %298  ;;  %v348_v0 = vpop.permute.xlu0 %347 }
 0x305   :  { %v304_v1 = vsel %vm201_vm2, %v299_v63, 0  ;;  %v353_v2 = vsel %vm201_vm2, %v348_v0, 0 }
 0x306   :  { %3194 = vmatpush3.bf16.xpose.msra.mxu1 %v304_v1  ;;  %3200 = vmatpush3.bf16.xpose.msra.mxu0 %v353_v2 }
 0x307   :  { %3205 = vmatprep.subr.bf16.mxu1 %v3674_v15  ;;  %3211 = vmatprep.subr.bf16.mxu0 %v3674_v15 }
 0x308   :  { %v397_v3 = vpop.permute.xlu1 %396  ;;  %v446_v4 = vpop.permute.xlu0 %445 }
 0x309   :  { %v402_v5 = vsel %vm201_vm2, %v397_v3, 0  ;;  %v451_v6 = vsel %vm201_vm2, %v446_v4, 0 }
 0x30c   :  { %v495_v7 = vpop.permute.xlu1 %494  ;;  %v544_v8 = vpop.permute.xlu0 %543 }
 0x30d   :  { %3196 = vmatmul.mubr.msk.bf16.vlgmr.msra.gmra.mrb[4].mxu1 %vm201_vm2, %v3812_v51  ;;  %3202 = vmatmul.mubr.msk.bf16.vlgmr.msra.gmra.mrb[8].mxu0 %vm201_vm2, %v3810_v50  ;;  %v500_v9 = vsel %vm201_vm2, %v495_v7, 0  ;;  %v549_v10 = vsel %vm201_vm2, %v544_v8, 0 }
 0x30e   :  { %3206 = vmatpush3.bf16.xpose.msra.mxu1 %v402_v5  ;;  %3212 = vmatpush3.bf16.xpose.msra.mxu0 %v451_v6 }
 0x30f   :  { %3207 = vmatprep.mubr.msk.bf16.mxu1 %vm3675_vm1, %v3674_v15  ;;  %3213 = vmatprep.mubr.msk.bf16.mxu0 %vm3675_vm1, %v3674_v15 }
 0x310   :  { %3217 = vmatprep.subr.bf16.mxu1 %v3674_v15  ;;  %3223 = vmatprep.subr.bf16.mxu0 %v3674_v15  ;;  %v752_v11 = vpop.permute.xlu1 %751 }
 0x311   :  { %v758_v12 = vsel %vm756_vm3, %v752_v11, 0 }
 0x315   :  { %3208 = vmatmul.mubr.msk.bf16.vlgmr.msra.gmra.mrb[8].mxu1 %vm201_vm2, %v3821_v56  ;;  %3214 = vmatmul.mubr.msk.bf16.vlgmr.msra.gmra.mrb[12].mxu0 %vm201_vm2, %v3819_v55 }
 0x316   :  { %3218 = vmatpush3.bf16.xpose.msra.mxu1 %v500_v9  ;;  %3224 = vmatpush3.bf16.xpose.msra.mxu0 %v549_v10  ;;  %v2990_v9 = vld [vmem:[%s4485_s1 + $0x6] ss:$0 sm:$0xff]  ;;  %v2991_v10 = vld [vmem:[%s4485_s1 + $0x7] ss:$0 sm:$0xff] }
 0x317   :  { %3219 = vmatprep.mubr.msk.bf16.mxu1 %vm3675_vm1, %v3674_v15  ;;  %3225 = vmatprep.mubr.msk.bf16.mxu0 %vm3675_vm1, %v3674_v15 }
 0x318   :  { %3229 = vmatprep.subr.bf16.mxu1 %v3674_v15  ;;  %3235 = vmatprep.subr.bf16.mxu0 %v3674_v15 }
 0x31d   :  { %3220 = vmatmul.mubr.msk.bf16.vlgmr.msra.gmra.mrb[12].mxu1 %vm201_vm2, %v3831_v62  ;;  %3226 = vmatmul.mubr.msk.bf16.vlgmr.msra.gmra.mrb[16].mxu0 %vm201_vm2, %v3829_v61 }
 0x31e   :  { %3230 = vmatpush3.bf16.msra.mxu1 %v758_v12  ;;  %3237 = vmatprep.mubr.msk.bf16.mxu0 %vm3675_vm1, %v3674_v15 }
 0x31f   :  { %3231 = vmatprep.mubr.msk.bf16.mxu1 %vm3675_vm1, %v3674_v15  ;;  %3241 = vmatprep.subr.bf16.mxu1 %v3674_v15 }
 0x36e   :  { %v291_v13 = vpop.f32.mrb[4].mxu0 }
 0x36f   :  { %v592_v16 = vmul.f32 0.35355338, %v291_v13  ;;  %v3191_v17 = vpop.f32.mrb[5].mxu0 }
 0x370   :  { %v294_v18 = vpop.f32.mrb[6].mxu0 }
 0x371   :  { %v3192_v19 = vpop.f32.mrb[7].mxu0  ;;  %v242_v20 = vpop.f32.mrb[0].mxu1  ;;  %v3887_v21 = vadd.f32 %v2985_v14, %v592_v16 }
 0x372   :  { %v591_v23 = vmul.f32 0.35355338, %v242_v20  ;;  %v3185_v24 = vpop.f32.mrb[1].mxu1 }
 0x373   :  { %v245_v25 = vpop.f32.mrb[2].mxu1  ;;  %v658_v26 = vsel %vm201_vm2, %v3887_v21, -inf }
 0x374   :  { %659 = vmax.xlane.f32.xlu0 %v658_v26  ;;  %v3186_v27 = vpop.f32.mrb[3].mxu1  ;;  %v3894_v28 = vadd.f32 %v2984_v22, %v591_v23 }
 0x376   :  { %v655_v29 = vsel %vm201_vm2, %v3894_v28, -inf }
 0x377   :  { %656 = vmax.xlane.f32.xlu1 %v655_v29 }
 0x3e0   :  { %v340_v30 = vpop.f32.mrb[4].mxu1  ;;  %v389_v33 = vpop.f32.mrb[8].mxu0 }
 0x3e1   :  { %v593_v36 = vmul.f32 0.35355338, %v340_v30  ;;  %v594_v37 = vmul.f32 0.35355338, %v389_v33  ;;  %v3197_v38 = vpop.f32.mrb[5].mxu1  ;;  %v3203_v39 = vpop.f32.mrb[9].mxu0 }
 0x3e2   :  { %v343_v40 = vpop.f32.mrb[6].mxu1  ;;  %v392_v41 = vpop.f32.mrb[10].mxu0 }
 0x3e3   :  { %v3198_v43 = vpop.f32.mrb[7].mxu1  ;;  %v3204_v44 = vpop.f32.mrb[11].mxu0  ;;  %v649_v45 = vadd.f32 %v2986_v34, %v593_v36  ;;  %v3904_v46 = vadd.f32 %v2987_v35, %v594_v37 }
 0x3e5   :  { %v661_v47 = vsel %vm201_vm2, %v649_v45, -inf  ;;  %v664_v53 = vsel %vm201_vm2, %v3904_v46, -inf }
 0x3e6   :  { %662 = vmax.xlane.f32.xlu0 %v661_v47 }
 0x3e8   :  { %v438_v49 = vpop.f32.mrb[8].mxu1  ;;  %v487_v52 = vpop.f32.mrb[12].mxu0 }
 0x3e9   :  { %v595_v57 = vmul.f32 0.35355338, %v438_v49  ;;  %v596_v58 = vmul.f32 0.35355338, %v487_v52  ;;  %v3209_v59 = vpop.f32.mrb[9].mxu1  ;;  %v3215_v60 = vpop.f32.mrb[13].mxu0 }
 0x3ea   :  { %v441_v63 = vpop.f32.mrb[10].mxu1  ;;  %665 = vmax.xlane.f32.xlu0 %v664_v53  ;;  %v490_v0 = vpop.f32.mrb[14].mxu0 }
 0x3eb   :  { %v3210_v1 = vpop.f32.mrb[11].mxu1  ;;  %v3216_v2 = vpop.f32.mrb[15].mxu0  ;;  %v651_v3 = vadd.f32 %v2988_v48, %v595_v57  ;;  %v3915_v4 = vadd.f32 %v2989_v54, %v596_v58 }
 0x3ed   :  { %v667_v5 = vsel %vm201_vm2, %v651_v3, -inf  ;;  %v670_v6 = vsel %vm201_vm2, %v3915_v4, -inf }
 0x3ee   :  { %668 = vmax.xlane.f32.xlu1 %v667_v5  ;;  %671 = vmax.xlane.f32.xlu0 %v670_v6 }
 0x3f0   :  { %v536_v7 = vpop.f32.mrb[12].mxu1  ;;  %v585_v8 = vpop.f32.mrb[16].mxu0 }
 0x3f1   :  { %v597_v11 = vmul.f32 0.35355338, %v536_v7  ;;  %v598_v12 = vmul.f32 0.35355338, %v585_v8  ;;  %v3221_v13 = vpop.f32.mrb[13].mxu1  ;;  %v3227_v14 = vpop.f32.mrb[17].mxu0 }
 0x3f2   :  { %v539_v16 = vpop.f32.mrb[14].mxu1  ;;  %v588_v17 = vpop.f32.mrb[18].mxu0 }
 0x3f3   :  { %v3222_v18 = vpop.f32.mrb[15].mxu1  ;;  %v3228_v19 = vpop.f32.mrb[19].mxu0  ;;  %v653_v20 = vadd.f32 %v2990_v9, %v597_v11  ;;  %v3926_v22 = vadd.f32 %v2991_v10, %v598_v12 }
 0x3f5   :  { %v673_v23 = vsel %vm201_vm2, %v653_v20, -inf  ;;  %v676_v24 = vsel %vm201_vm2, %v3926_v22, -inf }
 0x3f6   :  { %674 = vmax.xlane.f32.xlu1 %v673_v23  ;;  %677 = vmax.xlane.f32.xlu0 %v676_v24 }
 0x401   :  { %v660_v25 = vpop.xlane.xlu0 %659 }
 0x402   :  { %v680_v26 = vsub.f32 %v3887_v21, %v660_v25 }
 0x404   :  { %v657_v27 = vpop.xlane.xlu1 %656  ;;  %v689_v29 = vmul.f32 1.442695, %v680_v26 }
 0x405   :  { %v679_v30 = vsub.f32 %v3894_v28, %v657_v27 }
 0x406   :  { %3552 = vpow2.f32 %v689_v29 }
 0x407   :  { %848 = vrot.lane.b32.xlu1 %v3812_v51, %s3680_s29  ;;  %v687_v33 = vmul.f32 1.442695, %v679_v30 }
 0x409   :  { %3554 = vpow2.f32 %v687_v33 }
 0x40b   :  { %896 = vrot.lane.b32.xlu1 %v3810_v50, %s3680_s29 }
 0x40c   :  { %800 = vrot.lane.b32.xlu0 %v3804_v42, %s3680_s29 }
 0x410   :  { %v3553_v34 = vpop.eup %3552 }
 0x411   :  { %v706_v35 = vsel %vm201_vm2, %v3553_v34, 0.0 }
 0x413   :  { %v3940_v51 = vpop.eup %3554 }
 0x414   :  { %v703_v50 = vsel %vm201_vm2, %v3940_v51, 0.0 }
 0x42b   :  { %707 = vadd.xlane.f32.xlu0 %v706_v35 }
 0x42f   :  { %704 = vadd.xlane.f32.xlu1 %v703_v50 }
 0x440   :  { %944 = vrot.lane.b32.xlu1 %v3821_v56, %s3680_s29 }
 0x473   :  { %v663_v42 = vpop.xlane.xlu0 %662 }
 0x474   :  { %v681_v21 = vsub.f32 %v649_v45, %v663_v42 }
 0x476   :  { %v691_v36 = vmul.f32 1.442695, %v681_v21 }
 0x477   :  { %v666_v28 = vpop.xlane.xlu0 %665 }
 0x478   :  { %3556 = vpow2.f32 %v691_v36  ;;  %v682_v37 = vsub.f32 %v3904_v46, %v666_v28 }
 0x47a   :  { %v693_v38 = vmul.f32 1.442695, %v682_v37 }
 0x47b   :  { %v669_v39 = vpop.xlane.xlu1 %668  ;;  %v672_v43 = vpop.xlane.xlu0 %671 }
 0x47c   :  { %3558 = vpow2.f32 %v693_v38  ;;  %v683_v40 = vsub.f32 %v651_v3, %v669_v39  ;;  %v684_v63 = vsub.f32 %v3915_v4, %v672_v43 }
 0x47e   :  { %v695_v41 = vmul.f32 1.442695, %v683_v40  ;;  %v697_v0 = vmul.f32 1.442695, %v684_v63 }
 0x480   :  { %3560 = vpow2.f32 %v695_v41 }
 0x482   :  { %v3947_v44 = vpop.eup %3556 }
 0x483   :  { %v675_v47 = vpop.xlane.xlu1 %674  ;;  %v678_v48 = vpop.xlane.xlu0 %677  ;;  %v709_v56 = vsel %vm201_vm2, %v3947_v44, 0.0 }
 0x484   :  { %v685_v45 = vsub.f32 %v653_v20, %v675_v47  ;;  %710 = vadd.xlane.f32.xlu1 %v709_v56  ;;  %v686_v1 = vsub.f32 %v3926_v22, %v678_v48 }
 0x486   :  { %v3951_v49 = vpop.eup %3558  ;;  %v699_v52 = vmul.f32 1.442695, %v685_v45  ;;  %v701_v2 = vmul.f32 1.442695, %v686_v1 }
 0x487   :  { %v801_v46 = vpop.permute.xlu0 %800  ;;  %v712_v53 = vsel %vm201_vm2, %v3951_v49, 0.0  ;;  %v849_v3 = vpop.permute.xlu1 %848 }
 0x488   :  { %3562 = vpow2.f32 %v699_v52  ;;  %v806_v54 = vsel %vm756_vm3, %v801_v46, 0  ;;  %713 = vadd.xlane.f32.xlu0 %v712_v53  ;;  %v854_v17 = vsel %vm756_vm3, %v849_v3, 0 }
 0x489   :  { %3236 = vmatpush3.bf16.msra.mxu0 %v806_v54  ;;  %3564 = vpow2.f32 %v697_v0 }
 0x48a   :  { %v3956_v57 = vpop.eup %3560  ;;  %3247 = vmatprep.subr.bf16.mxu0 %v3674_v15  ;;  %3566 = vpow2.f32 %v701_v2 }
 0x48b   :  { %v715_v58 = vsel %vm201_vm2, %v3956_v57, 0.0  ;;  %v897_v5 = vpop.permute.xlu1 %896 }
 0x48c   :  { %716 = vadd.xlane.f32.xlu1 %v715_v58  ;;  %v902_v13 = vsel %vm756_vm3, %v897_v5, 0 }
 0x492   :  { %v3961_v59 = vpop.eup %3562 }
 0x493   :  { %v721_v60 = vsel %vm201_vm2, %v3961_v59, 0.0  ;;  %v3971_v7 = vpop.eup %3564 }
 0x494   :  { %722 = vadd.xlane.f32.xlu1 %v721_v60  ;;  %v3975_v9 = vpop.eup %3566 }
 0x49e   :  { %992 = vrot.lane.b32.xlu0 %v3819_v55, %s3680_s29  ;;  %v718_v55 = vsel %vm201_vm2, %v3971_v7, 0.0 }
 0x4a5   :  { %1040 = vrot.lane.b32.xlu1 %v3831_v62, %s3680_s29  ;;  %v724_v62 = vsel %vm201_vm2, %v3975_v9, 0.0 }
 0x4b8   :  { %v708_v6 = vpop.xlane.xlu0 %707 }
 0x4b9   :  { %3568 = vrcp.f32 %v708_v6 }
 0x4bc   :  { %v705_v8 = vpop.xlane.xlu1 %704 }
 0x4bd   :  { %3570 = vrcp.f32 %v705_v8  ;;  %719 = vadd.xlane.f32.xlu0 %v718_v55 }
 0x4c0   :  { %v945_v18 = vpop.permute.xlu1 %944 }
 0x4c1   :  { %725 = vadd.xlane.f32.xlu0 %v724_v62  ;;  %v950_v27 = vsel %vm756_vm3, %v945_v18, 0 }
 0x4c3   :  { %v3569_v4 = vpop.eup %3568 }
 0x4c4   :  { %v736_v10 = vmul.f32 %v3569_v4, %v3553_v34 }
 0x4c6   :  { %v744_v11 = vpack.c.bf16 %v736_v10, %v736_v10 }
 0x4c7   :  { %v3571_v12 = vpop.eup %3570 }
 0x4c8   :  { %v735_v14 = vmul.f32 %v3571_v12, %v3940_v51  ;;  %3238 = vmatmul.mubr.msk.bf16.vlgmr.msra.gmra.mrb[20].mxu0 %vm201_vm2, %v744_v11 }
 0x4c9   :  { %3248 = vmatpush3.bf16.msra.mxu0 %v902_v13  ;;  %3249 = vmatprep.mubr.msk.bf16.mxu0 %vm3675_vm1, %v3674_v15  ;;  %v3526_v13 = vld [vmem:[%s4488_s4] sm:$0xff]  }
 0x4ca   :  { %v743_v16 = vpack.c.bf16 %v735_v14, %v735_v14  ;;  %3259 = vmatprep.subr.bf16.mxu0 %v3674_v15  ;;  %v3527_v14 = vld [vmem:[%s4488_s4 + $0x8] sm:$0xff]  }
 0x4cc   :  { %3232 = vmatmul.mubr.msk.bf16.vlgmr.msra.gmra.mrb[16].mxu1 %vm201_vm2, %v743_v16 }
 0x4cd   :  { %3242 = vmatpush3.bf16.msra.mxu1 %v854_v17  ;;  %3243 = vmatprep.mubr.msk.bf16.mxu1 %vm3675_vm1, %v3674_v15 }
 0x4ce   :  { %3253 = vmatprep.subr.bf16.mxu1 %v3674_v15 }
 0x4d7   :  { %1088 = vrot.lane.b32.xlu0 %v3829_v61, %s3680_s29 }
 0x511   :  { %v711_v19 = vpop.xlane.xlu1 %710 }
 0x512   :  { %3572 = vrcp.f32 %v711_v19 }
 0x515   :  { %v714_v20 = vpop.xlane.xlu0 %713 }
 0x516   :  { %3574 = vrcp.f32 %v714_v20 }
 0x519   :  { %v717_v22 = vpop.xlane.xlu1 %716  ;;  %v993_v61 = vpop.permute.xlu0 %992 }
 0x51a   :  { %3576 = vrcp.f32 %v717_v22  ;;  %v998_v51 = vsel %vm756_vm3, %v993_v61, 0 }
 0x51c   :  { %v3573_v23 = vpop.eup %3572 }
 0x51d   :  { %v737_v24 = vmul.f32 %v3573_v23, %v3947_v44 }
 0x51f   :  { %v745_v25 = vpack.c.bf16 %v737_v24, %v737_v24 }
 0x520   :  { %v3575_v26 = vpop.eup %3574 }
 0x521   :  { %v738_v29 = vmul.f32 %v3575_v26, %v3951_v49  ;;  %3244 = vmatmul.mubr.msk.bf16.vlgmr.msra.gmra.mrb[20].mxu1 %vm201_vm2, %v745_v25  ;;  %v723_v30 = vpop.xlane.xlu1 %722 }
 0x522   :  { %3254 = vmatpush3.bf16.msra.mxu1 %v950_v27  ;;  %3578 = vrcp.f32 %v723_v30  ;;  %3255 = vmatprep.mubr.msk.bf16.mxu1 %vm3675_vm1, %v3674_v15 }
 0x523   :  { %v746_v33 = vpack.c.bf16 %v738_v29, %v738_v29  ;;  %3265 = vmatprep.subr.bf16.mxu1 %v3674_v15 }
 0x524   :  { %v3577_v34 = vpop.eup %3576 }
 0x525   :  { %v739_v35 = vmul.f32 %v3577_v34, %v3956_v57  ;;  %3250 = vmatmul.mubr.msk.bf16.vlgmr.msra.gmra.mrb[24].mxu0 %vm201_vm2, %v746_v33  ;;  %v1041_v50 = vpop.permute.xlu1 %1040 }
 0x526   :  { %3260 = vmatpush3.bf16.msra.mxu0 %v998_v51  ;;  %3261 = vmatprep.mubr.msk.bf16.mxu0 %vm3675_vm1, %v3674_v15  ;;  %v1046_v21 = vsel %vm756_vm3, %v1041_v50, 0 }
 0x527   :  { %v747_v42 = vpack.c.bf16 %v739_v35, %v739_v35  ;;  %3271 = vmatprep.subr.bf16.mxu0 %v3674_v15 }
 0x529   :  { %3256 = vmatmul.mubr.msk.bf16.vlgmr.msra.gmra.mrb[24].mxu1 %vm201_vm2, %v747_v42 }
 0x52a   :  { %3266 = vmatpush3.bf16.msra.mxu1 %v1046_v21  ;;  %3267 = vmatprep.mubr.msk.bf16.mxu1 %vm3675_vm1, %v3674_v15 }
 0x52b   :  { %3277 = vmatprep.subr.bf16.mxu1 %v3674_v15 }
 0x52c   :  { %v3579_v36 = vpop.eup %3578 }
 0x52d   :  { %v741_v28 = vmul.f32 %v3579_v36, %v3961_v59 }
 0x52f   :  { %v749_v37 = vpack.c.bf16 %v741_v28, %v741_v28 }
 0x531   :  { %3268 = vmatmul.mubr.msk.bf16.vlgmr.msra.gmra.mrb[28].mxu1 %vm201_vm2, %v749_v37 }
 0x532   :  { %3281 = vmatprep.mubr.msk.bf16.mxu1 %vm3675_vm1, %v3674_v15  ;;  %3278 = vmatpush3.bf16.msra.mxu1 %v3526_v13 }
 0x533   :  { %3279 = vmatprep.subr.bf16.mxu1 %v3674_v15 }
 0x536   :  { %3280 = vmatpush3.bf16.msra.mxu1 %v3527_v14 }
 0x537   :  { %3293 = vmatprep.subr.bf16.mxu1 %v3674_v15 }
 0x54a   :  { %v720_v38 = vpop.xlane.xlu0 %719 }
 0x54b   :  { %3580 = vrcp.f32 %v720_v38 }
 0x54e   :  { %v726_v39 = vpop.xlane.xlu0 %725 }
 0x54f   :  { %3582 = vrcp.f32 %v726_v39 }
 0x552   :  { %v1089_v43 = vpop.permute.xlu0 %1088 }
 0x553   :  { %v1094_v48 = vsel %vm756_vm3, %v1089_v43, 0 }
 0x555   :  { %v3581_v40 = vpop.eup %3580 }
 0x556   :  { %v740_v41 = vmul.f32 %v3581_v40, %v3971_v7  ;;  %v1173_v40 = vlaneseq }
 0x558   :  { %v748_v44 = vpack.c.bf16 %v740_v41, %v740_v41  ;;  %v4044_v41 = vshrl.u32 %v1173_v40, 7 }
 0x559   :  { %v3583_v47 = vpop.eup %3582 }
 0x55a   :  { %3262 = vmatmul.mubr.msk.bf16.vlgmr.msra.gmra.mrb[28].mxu0 %vm201_vm2, %v748_v44  ;;  %v742_v56 = vmul.f32 %v3583_v47, %v3975_v9  ;;  %v1175_v43 = vsub.s32 0, %v4044_v41  ;;  %v4050_v44 = vld [vmem:[%s4492_s8] sm:$0x3f] }
 0x55b   :  { %3272 = vmatpush3.bf16.msra.mxu0 %v1094_v48  ;;  %3273 = vmatprep.mubr.msk.bf16.mxu0 %vm3675_vm1, %v3674_v15 }
 0x55c   :  { %3285 = vmatprep.subr.bf16.mxu0 %v3674_v15  ;;  %v750_v45 = vpack.c.bf16 %v742_v56, %v742_v56  ;;  %v1176_v47 = vrot.slane %v4050_v44, %v1175_v43 }
 0x562   :  { %3274 = vmatmul.mubr.msk.bf16.vlgmr.msra.gmra.mrb[32].mxu0 %vm201_vm2, %v750_v45 }
 0x563   :  { %3289 = vmatprep.mubr.msk.bf16.mxu0 %vm3675_vm1, %v3674_v15 }
 0x59b   :  { %v842_v49 = vpop.f32.mrb[20].mxu0 }
 0x59c   :  { %v3239_v52 = vpop.f32.mrb[21].mxu0 }
 0x59d   :  { %v845_v46 = vpop.f32.mrb[22].mxu0 }
 0x59e   :  { %v3240_v53 = vpop.f32.mrb[23].mxu0 }
 0x59f   :  { %v794_v54 = vpop.f32.mrb[16].mxu1 }
 0x5a0   :  { %v3233_v57 = vpop.f32.mrb[17].mxu1 }
 0x5a1   :  { %v797_v58 = vpop.f32.mrb[18].mxu1 }
 0x5a2   :  { %v3234_v59 = vpop.f32.mrb[19].mxu1 }
 0x5f4   :  { %v890_v60 = vpop.f32.mrb[20].mxu1 }
 0x5f5   :  { %v3245_v63 = vpop.f32.mrb[21].mxu1 }
 0x5f6   :  { %v893_v0 = vpop.f32.mrb[22].mxu1 }
 0x5f7   :  { %v3246_v1 = vpop.f32.mrb[23].mxu1 }
 0x5f8   :  { %v938_v2 = vpop.f32.mrb[24].mxu0 }
 0x5f9   :  { %v3479_v3 = vpack.i.bf16 %v938_v2, %v890_v60  ;;  %v3251_v5 = vpop.f32.mrb[25].mxu0 }
 0x5fa   :  { %v941_v6 = vpop.f32.mrb[26].mxu0 }
 0x5fb   :  { %3480 = vrot.lane.b32.xlu1 %v3479_v3, %s3681_s0  ;;  %v3252_v7 = vpop.f32.mrb[27].mxu0 }
 0x5fc   :  { %v986_v8 = vpop.f32.mrb[24].mxu1  ;;  %v3529_v7 = vld [vmem:[%s4489_s5 + $0x8] sm:$0xff]  }
 0x5fd   :  { %v3257_v55 = vpop.f32.mrb[25].mxu1 }
 0x5fe   :  { %v989_v9 = vpop.f32.mrb[26].mxu1 }
 0x5ff   :  { %v3258_v62 = vpop.f32.mrb[27].mxu1 }
 0x604   :  { %v1082_v4 = vpop.f32.mrb[28].mxu1 }
 0x605   :  { %v3269_v10 = vpop.f32.mrb[29].mxu1 }
 0x606   :  { %v1085_v11 = vpop.f32.mrb[30].mxu1 }
 0x607   :  { %v3270_v12 = vpop.f32.mrb[31].mxu1  ;;  %v1263_v11 = vsub.s32 1, %v4044_v41 }
 0x609   :  { %v1264_v13 = vrot.slane %v4050_v44, %v1263_v11 }
 0x62d   :  { %v1034_v16 = vpop.f32.mrb[28].mxu0 }
 0x62e   :  { %v3484_v17 = vpack.i.bf16 %v1034_v16, %v986_v8  ;;  %v3263_v18 = vpop.f32.mrb[29].mxu0  ;;  %v1269_v16 = vsub.s32 2, %v4044_v41 }
 0x62f   :  { %v1037_v19 = vpop.f32.mrb[30].mxu0 }
 0x630   :  { %3485 = vrot.lane.b32.xlu0 %v3484_v17, %s3682_s21  ;;  %v3264_v20 = vpop.f32.mrb[31].mxu0 }
 0x631   :  { %v1270_v20 = vrot.slane %v4050_v44, %v1269_v16 }
 0x635   :  { %v1130_v22 = vpop.f32.mrb[32].mxu0 }
 0x636   :  { %v3489_v23 = vpack.i.bf16 %v1130_v22, %v1082_v4  ;;  %v3275_v24 = vpop.f32.mrb[33].mxu0 }
 0x637   :  { %v1133_v25 = vpop.f32.mrb[34].mxu0 }
 0x638   :  { %3490 = vrot.lane.b32.xlu1 %v3489_v23, %s3683_s22  ;;  %v3276_v26 = vpop.f32.mrb[35].mxu0 }
 0x639   :  { %v3530_v26 = vld [vmem:[%s4491_s7] sm:$0xff]  }
 0x66d   :  { %v3481_v27 = vpop.permute.xlu1 %3480 }
 0x66e   :  { %v3483_v30 = vunpack.i.h.bf16 %v3481_v27  ;;  %v3482_v61 = vunpack.i.l.bf16 %v3481_v27  ;;  %v3531_v27 = vld [vmem:[%s4491_s7 + $0x8] sm:$0xff]  }
 0x670   :  { %v1161_v51 = vsel %vm201_vm2, %v842_v49, %v3483_v30  ;;  %v1160_v50 = vsel %vm201_vm2, %v794_v54, %v3482_v61  ;;  %v3533_v30 = vld [vmem:[%s4491_s7 + $0x18] sm:$0xff]   ;;  %v3003_v61 = vld [vmem:[%s4490_s6] ss:$0 sm:$0xff] }
 0x6a2   :  { %v3486_v29 = vpop.permute.xlu0 %3485 }
 0x6a3   :  { %v3488_v33 = vunpack.i.h.bf16 %v3486_v29  ;;  %v3487_v34 = vunpack.i.l.bf16 %v3486_v29  ;;  %v3532_v29 = vld [vmem:[%s4491_s7 + $0x10] sm:$0xff]  }
 0x6a5   :  { %v1164_v36 = vsel %vm1162_vm4, %v1161_v51, %v3488_v33  ;;  %v1163_v28 = vsel %vm1162_vm4, %v1160_v50, %v3487_v34 }
 0x6aa   :  { %v3491_v35 = vpop.permute.xlu1 %3490 }
 0x6ab   :  { %v3493_v42 = vunpack.i.h.bf16 %v3491_v35  ;;  %v3492_v21 = vunpack.i.l.bf16 %v3491_v35 }
 0x6ad   :  { %v1167_v37 = vsel %vm1165_vm5, %v1164_v36, %v3493_v42  ;;  %v1166_v38 = vsel %vm1165_vm5, %v1163_v28, %v3492_v21 }
 0x6ae   :  { %v1168_v39 = vpack.c.bf16 %v1167_v37, %v1166_v38 }
 0x6b0   :  { %3282 = vmatmul.mubr.msk.bf16.vlgmr.msra.gmra.mrb[32].mxu1 %vm53_vm0, %v1168_v39 }
 0x6b1   :  { %3301 = vmatprep.mubr.msk.bf16.mxu1 %vm3675_vm1, %v3674_v15  ;;  %3294 = vmatpush3.bf16.msra.mxu1 %v3530_v26 }
 0x6b2   :  { %3295 = vmatprep.subr.bf16.mxu1 %v3674_v15 }
 0x6b5   :  { %3296 = vmatpush3.bf16.msra.mxu1 %v3531_v27 }
 0x6b6   :  { %3297 = vmatprep.subr.bf16.mxu1 %v3674_v15 }
 0x6b9   :  { %3298 = vmatpush3.bf16.msra.mxu1 %v3532_v29  ;;  %v1471_v29 = vsub.s32 4, %v4044_v41 }
 0x6ba   :  { %3299 = vmatprep.subr.bf16.mxu1 %v3674_v15 }
 0x6bd   :  { %3300 = vmatpush3.bf16.msra.mxu1 %v3533_v30  ;;  %v1472_v30 = vrot.slane %v4050_v44, %v1471_v29 }
 0x6be   :  { %3319 = vmatprep.subr.bf16.mxu1 %v3674_v15 }
 0x783   :  { %v1226_v48 = vpop.f32.mrb[32].mxu1 }
 0x784   :  { %v1227_v56 = vadd.f32 %v1226_v48, %v1176_v47  ;;  %v3283_v45 = vpop.f32.mrb[33].mxu1 }
 0x785   :  { %v1229_v49 = vpop.f32.mrb[34].mxu1 }
 0x786   :  { %v1230_v52 = vadd.f32 %v1229_v49, %v1176_v47  ;;  %v3284_v46 = vpop.f32.mrb[35].mxu1  ;;  %v1233_v53 = vadd.f32 %v1227_v56, %v3790_v31 }
 0x788   :  { %v1235_v54 = vsel %vm53_vm0, %v1233_v53, 0.0  ;;  %v1234_v57 = vadd.f32 %v1230_v52, %v3792_v32  ;;  %v3528_v32 = vld [vmem:[%s4489_s5] sm:$0xff]  }
 0x789   :  { %1236 = vadd.xlane.f32.xlu0 %v1235_v54  ;;  %3286 = vmatpush3.bf16.msra.mxu0 %v3528_v32 }
 0x78a   :  { %v1238_v58 = vsel %vm53_vm0, %v1234_v57, 0.0  ;;  %3287 = vmatprep.subr.bf16.mxu0 %v3674_v15 }
 0x78b   :  { %1239 = vadd.xlane.f32.xlu1 %v1238_v58 }
 0x78d   :  { %3288 = vmatpush3.bf16.msra.mxu0 %v3529_v7 }
 0x78e   :  { %3305 = vmatprep.subr.bf16.mxu0 %v3674_v15 }
 0x816   :  { %v1237_v59 = vpop.xlane.xlu0 %1236 }
 0x817   :  { %v1241_v60 = vmul.f32 0.03125, %v1237_v59 }
 0x818   :  { %v1240_v63 = vpop.xlane.xlu1 %1239 }
 0x819   :  { %v1243_v0 = vsub.f32 %v1233_v53, %v1241_v60  ;;  %v1242_v1 = vmul.f32 0.03125, %v1240_v63  ;;  %v1370_v60 = vsub.s32 3, %v4044_v41 }
 0x81b   :  { %v1244_v2 = vsub.f32 %v1234_v57, %v1242_v1  ;;  %v1245_v3 = vmul.f32 %v1243_v0, %v1243_v0  ;;  %v1371_v63 = vrot.slane %v4050_v44, %v1370_v60 }
 0x81d   :  { %v1247_v5 = vsel %vm53_vm0, %v1245_v3, 0.0  ;;  %v1246_v6 = vmul.f32 %v1244_v2, %v1244_v2 }
 0x81e   :  { %1248 = vadd.xlane.f32.xlu0 %v1247_v5 }
 0x81f   :  { %v1250_v31 = vsel %vm53_vm0, %v1246_v6, 0.0 }
 0x822   :  { %1251 = vadd.xlane.f32.xlu0 %v1250_v31 }
 0x8ab   :  { %v1249_v8 = vpop.xlane.xlu0 %1248 }
 0x8ac   :  { %v1253_v55 = vmul.f32 0.03125, %v1249_v8 }
 0x8ae   :  { %v1255_v9 = vadd.f32 1e-12, %v1253_v55 }
 0x8af   :  { %v1252_v62 = vpop.xlane.xlu0 %1251 }
 0x8b0   :  { %3584 = vrsqrt.f32 %v1255_v9  ;;  %v1254_v4 = vmul.f32 0.03125, %v1252_v62 }
 0x8b2   :  { %v1256_v10 = vadd.f32 1e-12, %v1254_v4 }
 0x8b4   :  { %3586 = vrsqrt.f32 %v1256_v10 }
 0x8ba   :  { %v3585_v12 = vpop.eup %3584 }
 0x8bb   :  { %v1259_v14 = vmul.f32 %v3585_v12, %v1243_v0 }
 0x8bd   :  { %v1265_v18 = vmul.f32 %v1264_v13, %v1259_v14 }
 0x8be   :  { %v3587_v17 = vpop.eup %3586 }
 0x8bf   :  { %v1260_v19 = vmul.f32 %v3587_v17, %v1244_v2  ;;  %v1271_v23 = vadd.f32 %v1270_v20, %v1265_v18 }
 0x8c1   :  { %v1266_v22 = vmul.f32 %v1264_v13, %v1260_v19  ;;  %v3534_v19 = vld [vmem:[%s4486_s2 + $0x10] sm:$0xff]  }
 0x8c3   :  { %v1272_v24 = vadd.f32 %v1270_v20, %v1266_v22  ;;  %v3535_v20 = vld [vmem:[%s4486_s2 + $0x18] sm:$0xff]  }
 0x8c5   :  { %v1273_v25 = vpack.c.bf16 %v1272_v24, %v1271_v23 }
 0x8c7   :  { %3290 = vmatmul.mubr.msk.bf16.vlgmr.msra.gmra.mrb[36].mxu0 %vm53_vm0, %v1273_v25 }
 0x8c8   :  { %3309 = vmatprep.mubr.msk.bf16.mxu0 %vm3675_vm1, %v3674_v15  ;;  %3306 = vmatpush3.bf16.msra.mxu0 %v3534_v19 }
 0x8c9   :  { %3307 = vmatprep.subr.bf16.mxu0 %v3674_v15 }
 0x8cc   :  { %3308 = vmatpush3.bf16.msra.mxu0 %v3535_v20 }
 0x8cd   :  { %3313 = vmatprep.subr.bf16.mxu0 %v3674_v15 }
 0x99a   :  { %v1334_v33 = vpop.f32.mrb[36].mxu0 }
 0x99b   :  { %v1335_v34 = vadd.f32 %v3003_v61, %v1334_v33  ;;  %v3291_v35 = vpop.f32.mrb[37].mxu0 }
 0x99c   :  { %v1337_v51 = vpop.f32.mrb[38].mxu0 }
 0x99d   :  { %v1343_v50 = vmul.f32 0.044715, %v1335_v34  ;;  %v1338_v42 = vadd.f32 %v3003_v61, %v1337_v51  ;;  %v3292_v21 = vpop.f32.mrb[39].mxu0  ;;  %v1341_v46 = vmul.f32 0.5, %v1335_v34  ;;  %v1477_v61 = vsub.s32 5, %v4044_v41  ;;  %v3547_v41 = vld [vmem:[%s4496_s12 + $0x8] sm:$0xff]  }
 0x99f   :  { %v1345_v36 = vmul.f32 %v1343_v50, %v1335_v34  ;;  %v1344_v28 = vmul.f32 0.044715, %v1338_v42  ;;  %v1342_v53 = vmul.f32 0.5, %v1338_v42 }
 0x9a1   :  { %v1347_v37 = vmul.f32 %v1345_v36, %v1335_v34  ;;  %v1346_v38 = vmul.f32 %v1344_v28, %v1338_v42 }
 0x9a3   :  { %v1349_v39 = vadd.f32 %v1347_v37, %v1335_v34  ;;  %v1348_v40 = vmul.f32 %v1346_v38, %v1338_v42  ;;  %v3018_v38 = vld [vmem:[%s4487_s3 + $0x1] ss:$0 sm:$0xff] }
 0x9a5   :  { %v1351_v47 = vmul.f32 0.7978846, %v1349_v39  ;;  %v1350_v48 = vadd.f32 %v1348_v40, %v1338_v42  ;;  %v1478_v42 = vrot.slane %v4050_v44, %v1477_v61 }
 0x9a7   :  { %3588 = vtanh.f32 %v1351_v47  ;;  %v1352_v56 = vmul.f32 0.7978846, %v1350_v48 }
 0x9a9   :  { %3590 = vtanh.f32 %v1352_v56 }
 0x9b1   :  { %v3589_v45 = vpop.eup %3588 }
 0x9b2   :  { %v1355_v49 = vadd.f32 1.0, %v3589_v45 }
 0x9b3   :  { %v3591_v52 = vpop.eup %3590 }
 0x9b4   :  { %v1356_v54 = vadd.f32 1.0, %v3591_v52  ;;  %v1357_v57 = vmul.f32 %v1355_v49, %v1341_v46 }
 0x9b6   :  { %v1358_v58 = vmul.f32 %v1356_v54, %v1342_v53 }
 0x9b8   :  { %v1359_v59 = vpack.c.bf16 %v1358_v58, %v1357_v57 }
 0x9ba   :  { %3302 = vmatmul.mubr.msk.bf16.vlgmr.msra.gmra.mrb[36].mxu1 %vm1396_vm6, %v1359_v59 }
 0x9bb   :  { %3321 = vmatprep.mubr.msk.bf16.mxu1 %vm3675_vm1, %v3674_v15 }
 0xa8d   :  { %v1434_v0 = vpop.f32.mrb[36].mxu1 }
 0xa8e   :  { %v1435_v1 = vadd.f32 %v1434_v0, %v1371_v63  ;;  %v3303_v2 = vpop.f32.mrb[37].mxu1 }
 0xa8f   :  { %v1437_v3 = vpop.f32.mrb[38].mxu1 }
 0xa90   :  { %v1438_v5 = vadd.f32 %v1437_v3, %v1371_v63  ;;  %v3304_v6 = vpop.f32.mrb[39].mxu1  ;;  %v1441_v31 = vadd.f32 %v1435_v1, %v1271_v23 }
 0xa92   :  { %v1443_v32 = vsel %vm53_vm0, %v1441_v31, 0.0  ;;  %v1442_v7 = vadd.f32 %v1438_v5, %v1272_v24 }
 0xa93   :  { %1444 = vadd.xlane.f32.xlu0 %v1443_v32 }
 0xa94   :  { %v1446_v8 = vsel %vm53_vm0, %v1442_v7, 0.0 }
 0xa95   :  { %1447 = vadd.xlane.f32.xlu1 %v1446_v8 }
 0xb20   :  { %v1445_v55 = vpop.xlane.xlu0 %1444 }
 0xb21   :  { %v1449_v9 = vmul.f32 0.03125, %v1445_v55 }
 0xb22   :  { %v1448_v62 = vpop.xlane.xlu1 %1447 }
 0xb23   :  { %v1451_v4 = vsub.f32 %v1441_v31, %v1449_v9  ;;  %v1450_v10 = vmul.f32 0.03125, %v1448_v62 }
 0xb25   :  { %v1452_v12 = vsub.f32 %v1442_v7, %v1450_v10  ;;  %v1453_v13 = vmul.f32 %v1451_v4, %v1451_v4 }
 0xb27   :  { %v1455_v14 = vsel %vm53_vm0, %v1453_v13, 0.0  ;;  %v1454_v17 = vmul.f32 %v1452_v12, %v1452_v12 }
 0xb28   :  { %1456 = vadd.xlane.f32.xlu0 %v1455_v14 }
 0xb29   :  { %v1458_v18 = vsel %vm53_vm0, %v1454_v17, 0.0 }
 0xb2a   :  { %1459 = vadd.xlane.f32.xlu1 %v1458_v18 }
 0xbb5   :  { %v1457_v22 = vpop.xlane.xlu0 %1456 }
 0xbb6   :  { %v1461_v23 = vmul.f32 0.03125, %v1457_v22 }
 0xbb7   :  { %v1460_v24 = vpop.xlane.xlu1 %1459 }
 0xbb8   :  { %v1463_v25 = vadd.f32 1e-12, %v1461_v23  ;;  %v1462_v26 = vmul.f32 0.03125, %v1460_v24 }
 0xbba   :  { %3592 = vrsqrt.f32 %v1463_v25  ;;  %v1464_v27 = vadd.f32 1e-12, %v1462_v26 }
 0xbbc   :  { %3594 = vrsqrt.f32 %v1464_v27 }
 0xbc4   :  { %v3593_v33 = vpop.eup %3592 }
 0xbc5   :  { %v1467_v34 = vmul.f32 %v3593_v33, %v1451_v4 }
 0xbc6   :  { %v3595_v35 = vpop.eup %3594 }
 0xbc7   :  { %v1473_v51 = vmul.f32 %v1472_v30, %v1467_v34  ;;  %v1468_v50 = vmul.f32 %v3595_v35, %v1452_v12 }
 0xbc9   :  { %v1474_v21 = vmul.f32 %v1472_v30, %v1468_v50  ;;  %v4126_v36 = vadd.f32 %v1478_v42, %v1473_v51  ;;  %v3642_v51 = vld [vmem:[%s4485_s1 + $0x1] ss:$0 sm:$0xff] }
 0xbcb   :  { %v4128_v28 = vadd.f32 %v1478_v42, %v1474_v21 }
 0xbcd   :  { %v1483_v37 = vpack.c.bf16 %v4128_v28, %v4126_v36 }
 0xbcf   :  { %3310 = vmatmul.mubr.msk.bf16.vlgmr.msra.gmra.mrb[40].mxu0 %vm53_vm0, %v1483_v37 }
 0xbd0   :  { %3315 = vmatprep.mubr.msk.bf16.mxu0 %vm3675_vm1, %v3674_v15 }
 0xca2   :  { %v1546_v39 = vpop.f32.mrb[40].mxu0 }
 0xca3   :  { %v3311_v40 = vpop.f32.mrb[41].mxu0  ;;  %v1547_v47 = vadd.f32 %v3018_v38, %v1546_v39 }
 0xca4   :  { %v1549_v44 = vpop.f32.mrb[42].mxu0  ;;  %v3643_v40 = vld [vmem:[%s4485_s1] ss:$0 sm:$0xff] }
 0xca5   :  { %v1550_v48 = vadd.f32 %v3018_v38, %v1549_v44  ;;  %v3312_v56 = vpop.f32.mrb[43].mxu0  ;;  %v1573_v52 = vpack.c.bf16 %v1547_v47, %v1547_v47 }
 0xca7   :  { %v3499_v45 = vpack.i.bf16 %v1550_v48, %v1547_v47  ;;  %v4140_v49 = vpack.c.bf16 %v1550_v48, %v1550_v48 }
 0xca9   :  { %3500 = vrot.lane.b32.xlu1 %v3499_v45, %s3676_s9  ;;  %3495 = vrot.lane.b32.xlu0 %v3499_v45, %s3677_s26 }
 0xcad   :  { %3505 = vrot.lane.b32.xlu1 %v3499_v45, %s3678_s27  ;;  %1631 = vrot.lane.b32.xlu0 %v4140_v49, %s3679_s28 }
 0xcb1   :  { %1582 = vrot.lane.b32.xlu1 %v1573_v52, %s3679_s28 }
 0xd1b   :  { %v3501_v46 = vpop.permute.xlu1 %3500  ;;  %v3496_v53 = vpop.permute.xlu0 %3495 }
 0xd1c   :  { %v3498_v54 = vunpack.i.h.bf16 %v3496_v53  ;;  %v3497_v57 = vunpack.i.l.bf16 %v3496_v53  ;;  %v3503_v58 = vunpack.i.h.bf16 %v3501_v46  ;;  %v3502_v59 = vunpack.i.l.bf16 %v3501_v46 }
 0xd1e   :  { %v4146_v63 = vpack.c.bf16 %v3498_v54, %v3498_v54  ;;  %v4148_v0 = vpack.c.bf16 %v3497_v57, %v3497_v57  ;;  %v4155_v5 = vpack.c.bf16 %v3503_v58, %v3503_v58  ;;  %v4157_v6 = vpack.c.bf16 %v3502_v59, %v3502_v59 }
 0xd1f   :  { %v3506_v1 = vpop.permute.xlu1 %3505  ;;  %v1632_v2 = vpop.permute.xlu0 %1631 }
 0xd20   :  { %v1637_v3 = vsel %vm201_vm2, %v1632_v2, 0  ;;  %1680 = vrot.lane.b32.xlu1 %v4148_v0, %s3679_s28  ;;  %1729 = vrot.lane.b32.xlu0 %v4146_v63, %s3679_s28  ;;  %v3508_v31 = vunpack.i.h.bf16 %v3506_v1  ;;  %v3507_v32 = vunpack.i.l.bf16 %v3506_v1  ;;  %v3644_v1 = vld [vmem:[%s4485_s1 + $0x2] ss:$0 sm:$0xff] }
 0xd21   :  { %3320 = vmatpush3.bf16.xpose.msra.mxu1 %v1637_v3  ;;  %v3645_v3 = vld [vmem:[%s4485_s1 + $0x3] ss:$0 sm:$0xff] }
 0xd22   :  { %3331 = vmatprep.subr.bf16.mxu1 %v3674_v15  ;;  %v4165_v55 = vpack.c.bf16 %v3508_v31, %v3508_v31  ;;  %v4167_v9 = vpack.c.bf16 %v3507_v32, %v3507_v32 }
 0xd23   :  { %v1583_v7 = vpop.permute.xlu1 %1582 }
 0xd24   :  { %v1588_v8 = vsel %vm201_vm2, %v1583_v7, 0  ;;  %1778 = vrot.lane.b32.xlu1 %v4157_v6, %s3679_s28  ;;  %1827 = vrot.lane.b32.xlu0 %v4155_v5, %s3679_s28 }
 0xd25   :  { %3314 = vmatpush3.bf16.xpose.msra.mxu0 %v1588_v8 }
 0xd26   :  { %3325 = vmatprep.subr.bf16.mxu0 %v3674_v15 }
 0xd28   :  { %1876 = vrot.lane.b32.xlu1 %v4167_v9, %s3679_s28  ;;  %1925 = vrot.lane.b32.xlu0 %v4165_v55, %s3679_s28 }
 0xd29   :  { %3322 = vmatmul.mubr.msk.bf16.vlgmr.msra.gmra.mrb[40].mxu1 %vm201_vm2, %v4140_v49 }
 0xd2a   :  { %3333 = vmatprep.mubr.msk.bf16.mxu1 %vm3675_vm1, %v3674_v15 }
 0xd2c   :  { %3316 = vmatmul.mubr.msk.bf16.vlgmr.msra.gmra.mrb[44].mxu0 %vm201_vm2, %v1573_v52  ;;  %2085 = vrot.lane.b32.xlu1 %v1573_v52, %s3680_s29 }
 0xd2d   :  { %3327 = vmatprep.mubr.msk.bf16.mxu0 %vm3675_vm1, %v3674_v15 }
 0xd92   :  { %v1681_v62 = vpop.permute.xlu1 %1680  ;;  %v1730_v4 = vpop.permute.xlu0 %1729 }
 0xd93   :  { %v1686_v10 = vsel %vm201_vm2, %v1681_v62, 0  ;;  %v1735_v12 = vsel %vm201_vm2, %v1730_v4, 0 }
 0xd94   :  { %3326 = vmatpush3.bf16.xpose.msra.mxu0 %v1686_v10  ;;  %3332 = vmatpush3.bf16.xpose.msra.mxu1 %v1735_v12 }
 0xd95   :  { %3337 = vmatprep.subr.bf16.mxu0 %v3674_v15  ;;  %3343 = vmatprep.subr.bf16.mxu1 %v3674_v15 }
 0xd96   :  { %v1779_v13 = vpop.permute.xlu1 %1778  ;;  %v1828_v14 = vpop.permute.xlu0 %1827 }
 0xd97   :  { %v1784_v17 = vsel %vm201_vm2, %v1779_v13, 0  ;;  %v1833_v18 = vsel %vm201_vm2, %v1828_v14, 0 }
 0xd9a   :  { %v1877_v19 = vpop.permute.xlu1 %1876  ;;  %v1926_v20 = vpop.permute.xlu0 %1925 }
 0xd9b   :  { %3328 = vmatmul.mubr.msk.bf16.vlgmr.msra.gmra.mrb[48].mxu0 %vm201_vm2, %v4148_v0  ;;  %3334 = vmatmul.mubr.msk.bf16.vlgmr.msra.gmra.mrb[44].mxu1 %vm201_vm2, %v4146_v63  ;;  %v1882_v22 = vsel %vm201_vm2, %v1877_v19, 0  ;;  %v1931_v23 = vsel %vm201_vm2, %v1926_v20, 0  ;;  %v3646_v20 = vld [vmem:[%s4485_s1 + $0x5] ss:$0 sm:$0xff] }
 0xd9c   :  { %3338 = vmatpush3.bf16.xpose.msra.mxu0 %v1784_v17  ;;  %3344 = vmatpush3.bf16.xpose.msra.mxu1 %v1833_v18 }
 0xd9d   :  { %3339 = vmatprep.mubr.msk.bf16.mxu0 %vm3675_vm1, %v3674_v15  ;;  %3345 = vmatprep.mubr.msk.bf16.mxu1 %vm3675_vm1, %v3674_v15 }
 0xd9e   :  { %3349 = vmatprep.subr.bf16.mxu0 %v3674_v15  ;;  %3355 = vmatprep.subr.bf16.mxu1 %v3674_v15  ;;  %v2086_v24 = vpop.permute.xlu1 %2085 }
 0xd9f   :  { %v2091_v25 = vsel %vm756_vm3, %v2086_v24, 0 }
 0xda3   :  { %3340 = vmatmul.mubr.msk.bf16.vlgmr.msra.gmra.mrb[52].mxu0 %vm201_vm2, %v4157_v6  ;;  %3346 = vmatmul.mubr.msk.bf16.vlgmr.msra.gmra.mrb[48].mxu1 %vm201_vm2, %v4155_v5 }
 0xda4   :  { %3350 = vmatpush3.bf16.xpose.msra.mxu0 %v1882_v22  ;;  %3356 = vmatpush3.bf16.xpose.msra.mxu1 %v1931_v23  ;;  %v3647_v23 = vld [vmem:[%s4485_s1 + $0x4] ss:$0 sm:$0xff] }
 0xda5   :  { %3351 = vmatprep.mubr.msk.bf16.mxu0 %vm3675_vm1, %v3674_v15  ;;  %3357 = vmatprep.mubr.msk.bf16.mxu1 %vm3675_vm1, %v3674_v15 }
 0xda6   :  { %3361 = vmatprep.subr.bf16.mxu0 %v3674_v15  ;;  %3367 = vmatprep.subr.bf16.mxu1 %v3674_v15 }
 0xdab   :  { %3352 = vmatmul.mubr.msk.bf16.vlgmr.msra.gmra.mrb[56].mxu0 %vm201_vm2, %v4167_v9  ;;  %3358 = vmatmul.mubr.msk.bf16.vlgmr.msra.gmra.mrb[52].mxu1 %vm201_vm2, %v4165_v55 }
 0xdac   :  { %3362 = vmatpush3.bf16.msra.mxu0 %v2091_v25  ;;  %3369 = vmatprep.mubr.msk.bf16.mxu1 %vm3675_vm1, %v3674_v15 }
 0xdad   :  { %3363 = vmatprep.mubr.msk.bf16.mxu0 %vm3675_vm1, %v3674_v15  ;;  %3373 = vmatprep.subr.bf16.mxu0 %v3674_v15 }
 0xdfc   :  { %v1673_v26 = vpop.f32.mrb[40].mxu1 }
 0xdfd   :  { %v1974_v27 = vmul.f32 0.35355338, %v1673_v26  ;;  %v3323_v30 = vpop.f32.mrb[41].mxu1 }
 0xdfe   :  { %v1676_v33 = vpop.f32.mrb[42].mxu1 }
 0xdff   :  { %v3324_v34 = vpop.f32.mrb[43].mxu1  ;;  %v1624_v35 = vpop.f32.mrb[44].mxu0  ;;  %v4223_v50 = vadd.f32 %v3642_v51, %v1974_v27 }
 0xe00   :  { %v1973_v42 = vmul.f32 0.35355338, %v1624_v35  ;;  %v3317_v21 = vpop.f32.mrb[45].mxu0 }
 0xe01   :  { %v1992_v37 = vsel %vm201_vm2, %v4223_v50, -inf  ;;  %v1627_v38 = vpop.f32.mrb[46].mxu0 }
 0xe02   :  { %1993 = vmax.xlane.f32.xlu0 %v1992_v37  ;;  %v3318_v39 = vpop.f32.mrb[47].mxu0  ;;  %v4230_v44 = vadd.f32 %v3643_v40, %v1973_v42 }
 0xe03   :  { %v3648_v39 = vld [vmem:[%s4485_s1 + $0x7] ss:$0 sm:$0xff] }
 0xe04   :  { %v1989_v47 = vsel %vm201_vm2, %v4230_v44, -inf }
 0xe05   :  { %1990 = vmax.xlane.f32.xlu1 %v1989_v47  ;;  %v3649_v47 = vld [vmem:[%s4485_s1 + $0x6] ss:$0 sm:$0xff] }
 0xe6e   :  { %v1722_v48 = vpop.f32.mrb[48].mxu0  ;;  %v1771_v56 = vpop.f32.mrb[44].mxu1 }
 0xe6f   :  { %v1975_v45 = vmul.f32 0.35355338, %v1722_v48  ;;  %v1976_v52 = vmul.f32 0.35355338, %v1771_v56  ;;  %v3329_v46 = vpop.f32.mrb[49].mxu0  ;;  %v3335_v53 = vpop.f32.mrb[45].mxu1 }
 0xe70   :  { %v1725_v54 = vpop.f32.mrb[50].mxu0  ;;  %v1774_v57 = vpop.f32.mrb[46].mxu1 }
 0xe71   :  { %v3330_v58 = vpop.f32.mrb[51].mxu0  ;;  %v3336_v59 = vpop.f32.mrb[47].mxu1  ;;  %v4237_v2 = vadd.f32 %v3644_v1, %v1975_v45  ;;  %v4242_v31 = vadd.f32 %v3645_v3, %v1976_v52 }
 0xe73   :  { %v1995_v32 = vsel %vm201_vm2, %v4237_v2, -inf  ;;  %v1998_v62 = vsel %vm201_vm2, %v4242_v31, -inf }
 0xe74   :  { %1996 = vmax.xlane.f32.xlu0 %v1995_v32 }
 0xe76   :  { %v1820_v7 = vpop.f32.mrb[52].mxu0  ;;  %v1869_v8 = vpop.f32.mrb[48].mxu1 }
 0xe77   :  { %v1977_v4 = vmul.f32 0.35355338, %v1820_v7  ;;  %v1978_v10 = vmul.f32 0.35355338, %v1869_v8  ;;  %v3341_v12 = vpop.f32.mrb[53].mxu0  ;;  %v3347_v13 = vpop.f32.mrb[49].mxu1 }
 0xe78   :  { %v1872_v14 = vpop.f32.mrb[50].mxu1  ;;  %1999 = vmax.xlane.f32.xlu0 %v1998_v62  ;;  %v1823_v17 = vpop.f32.mrb[54].mxu0 }
 0xe79   :  { %v3342_v18 = vpop.f32.mrb[55].mxu0  ;;  %v3348_v19 = vpop.f32.mrb[51].mxu1  ;;  %v4251_v22 = vadd.f32 %v3646_v20, %v1978_v10  ;;  %v1985_v24 = vadd.f32 %v3647_v23, %v1977_v4 }
 0xe7b   :  { %v2004_v25 = vsel %vm201_vm2, %v4251_v22, -inf  ;;  %v2001_v26 = vsel %vm201_vm2, %v1985_v24, -inf }
 0xe7c   :  { %2005 = vmax.xlane.f32.xlu0 %v2004_v25  ;;  %2002 = vmax.xlane.f32.xlu1 %v2001_v26 }
 0xe7e   :  { %v1918_v27 = vpop.f32.mrb[56].mxu0  ;;  %v1967_v30 = vpop.f32.mrb[52].mxu1 }
 0xe7f   :  { %v1979_v33 = vmul.f32 0.35355338, %v1918_v27  ;;  %v1980_v34 = vmul.f32 0.35355338, %v1967_v30  ;;  %v3353_v35 = vpop.f32.mrb[57].mxu0  ;;  %v3359_v51 = vpop.f32.mrb[53].mxu1 }
 0xe80   :  { %v1921_v42 = vpop.f32.mrb[58].mxu0  ;;  %v1970_v21 = vpop.f32.mrb[54].mxu1 }
 0xe81   :  { %v3354_v37 = vpop.f32.mrb[59].mxu0  ;;  %v3360_v38 = vpop.f32.mrb[55].mxu1  ;;  %v4262_v40 = vadd.f32 %v3648_v39, %v1980_v34  ;;  %v1987_v48 = vadd.f32 %v3649_v47, %v1979_v33 }
 0xe83   :  { %v2010_v56 = vsel %vm201_vm2, %v4262_v40, -inf  ;;  %v2007_v45 = vsel %vm201_vm2, %v1987_v48, -inf }
 0xe84   :  { %2011 = vmax.xlane.f32.xlu0 %v2010_v56  ;;  %2008 = vmax.xlane.f32.xlu1 %v2007_v45 }
 0xe8f   :  { %v1994_v52 = vpop.xlane.xlu0 %1993 }
 0xe90   :  { %v2014_v46 = vsub.f32 %v4223_v50, %v1994_v52 }
 0xe92   :  { %v1991_v53 = vpop.xlane.xlu1 %1990  ;;  %v2023_v54 = vmul.f32 1.442695, %v2014_v46 }
 0xe93   :  { %v2013_v57 = vsub.f32 %v4230_v44, %v1991_v53 }
 0xe94   :  { %3596 = vpow2.f32 %v2023_v54 }
 0xe95   :  { %2181 = vrot.lane.b32.xlu1 %v4148_v0, %s3680_s29  ;;  %v2021_v58 = vmul.f32 1.442695, %v2013_v57 }
 0xe97   :  { %3598 = vpow2.f32 %v2021_v58 }
 0xe99   :  { %2229 = vrot.lane.b32.xlu1 %v4146_v63, %s3680_s29 }
 0xe9a   :  { %2133 = vrot.lane.b32.xlu0 %v4140_v49, %s3680_s29 }
 0xe9e   :  { %v3597_v59 = vpop.eup %3596 }
 0xe9f   :  { %v2040_v1 = vsel %vm201_vm2, %v3597_v59, 0.0 }
 0xea1   :  { %v4279_v0 = vpop.eup %3598 }
 0xea2   :  { %v2037_v63 = vsel %vm201_vm2, %v4279_v0, 0.0 }
 0xeb9   :  { %2041 = vadd.xlane.f32.xlu0 %v2040_v1 }
 0xebd   :  { %2038 = vadd.xlane.f32.xlu1 %v2037_v63 }
 0xece   :  { %2277 = vrot.lane.b32.xlu1 %v4157_v6, %s3680_s29 }
 0xf01   :  { %v1997_v49 = vpop.xlane.xlu0 %1996 }
 0xf02   :  { %v2015_v50 = vsub.f32 %v4237_v2, %v1997_v49 }
 0xf04   :  { %v2025_v44 = vmul.f32 1.442695, %v2015_v50 }
 0xf05   :  { %v2000_v3 = vpop.xlane.xlu0 %1999 }
 0xf06   :  { %3600 = vpow2.f32 %v2025_v44  ;;  %v2016_v32 = vsub.f32 %v4242_v31, %v2000_v3 }
 0xf08   :  { %v2027_v7 = vmul.f32 1.442695, %v2016_v32 }
 0xf09   :  { %v2003_v8 = vpop.xlane.xlu1 %2002  ;;  %v2006_v10 = vpop.xlane.xlu0 %2005 }
 0xf0a   :  { %3602 = vpow2.f32 %v2027_v7  ;;  %v2017_v62 = vsub.f32 %v1985_v24, %v2003_v8  ;;  %v2018_v27 = vsub.f32 %v4251_v22, %v2006_v10 }
 0xf0c   :  { %v2029_v4 = vmul.f32 1.442695, %v2017_v62  ;;  %v2031_v30 = vmul.f32 1.442695, %v2018_v27 }
 0xf0e   :  { %3604 = vpow2.f32 %v2029_v4 }
 0xf10   :  { %v4287_v12 = vpop.eup %3600 }
 0xf11   :  { %v2012_v13 = vpop.xlane.xlu0 %2011  ;;  %v2009_v14 = vpop.xlane.xlu1 %2008  ;;  %v2043_v6 = vsel %vm201_vm2, %v4287_v12, 0.0 }
 0xf12   :  { %v2019_v2 = vsub.f32 %v1987_v48, %v2009_v14  ;;  %2044 = vadd.xlane.f32.xlu1 %v2043_v6  ;;  %v2020_v33 = vsub.f32 %v4262_v40, %v2012_v13 }
 0xf14   :  { %v4291_v17 = vpop.eup %3602  ;;  %v2033_v18 = vmul.f32 1.442695, %v2019_v2  ;;  %v2035_v34 = vmul.f32 1.442695, %v2020_v33 }
 0xf15   :  { %v2134_v31 = vpop.permute.xlu0 %2133  ;;  %v2046_v19 = vsel %vm201_vm2, %v4291_v17, 0.0  ;;  %v2182_v35 = vpop.permute.xlu1 %2181 }
 0xf16   :  { %v2139_v20 = vsel %vm756_vm3, %v2134_v31, 0  ;;  %2047 = vadd.xlane.f32.xlu0 %v2046_v19  ;;  %3606 = vpow2.f32 %v2033_v18  ;;  %v2187_v52 = vsel %vm756_vm3, %v2182_v35, 0 }
 0xf17   :  { %3368 = vmatpush3.bf16.msra.mxu1 %v2139_v20  ;;  %3608 = vpow2.f32 %v2031_v30 }
 0xf18   :  { %3379 = vmatprep.subr.bf16.mxu1 %v3674_v15  ;;  %v4297_v23 = vpop.eup %3604  ;;  %3610 = vpow2.f32 %v2035_v34 }
 0xf19   :  { %v2049_v24 = vsel %vm201_vm2, %v4297_v23, 0.0  ;;  %v2230_v51 = vpop.permute.xlu1 %2229 }
 0xf1a   :  { %2050 = vadd.xlane.f32.xlu1 %v2049_v24  ;;  %v2235_v48 = vsel %vm756_vm3, %v2230_v51, 0 }
 0xf20   :  { %v4301_v25 = vpop.eup %3606 }
 0xf21   :  { %v2055_v26 = vsel %vm201_vm2, %v4301_v25, 0.0  ;;  %v4311_v21 = vpop.eup %3608 }
 0xf22   :  { %2056 = vadd.xlane.f32.xlu1 %v2055_v26  ;;  %v4315_v38 = vpop.eup %3610 }
 0xf2c   :  { %2325 = vrot.lane.b32.xlu0 %v4155_v5, %s3680_s29  ;;  %v2052_v5 = vsel %vm201_vm2, %v4311_v21, 0.0 }
 0xf33   :  { %2373 = vrot.lane.b32.xlu1 %v4167_v9, %s3680_s29  ;;  %v2058_v9 = vsel %vm201_vm2, %v4315_v38, 0.0 }
 0xf46   :  { %v2042_v42 = vpop.xlane.xlu0 %2041 }
 0xf47   :  { %3612 = vrcp.f32 %v2042_v42 }
 0xf4a   :  { %v2039_v37 = vpop.xlane.xlu1 %2038 }
 0xf4b   :  { %3614 = vrcp.f32 %v2039_v37  ;;  %2053 = vadd.xlane.f32.xlu0 %v2052_v5 }
 0xf4e   :  { %v2278_v46 = vpop.permute.xlu1 %2277 }
 0xf4f   :  { %2059 = vadd.xlane.f32.xlu0 %v2058_v9  ;;  %v2283_v63 = vsel %vm756_vm3, %v2278_v46, 0 }
 0xf51   :  { %v3613_v22 = vpop.eup %3612 }
 0xf52   :  { %v2070_v39 = vmul.f32 %v3613_v22, %v3597_v59 }
 0xf54   :  { %v2078_v40 = vpack.c.bf16 %v2070_v39, %v2070_v39 }
 0xf55   :  { %v3615_v47 = vpop.eup %3614 }
 0xf56   :  { %v2069_v56 = vmul.f32 %v3615_v47, %v4279_v0  ;;  %3370 = vmatmul.mubr.msk.bf16.vlgmr.msra.gmra.mrb[56].mxu1 %vm201_vm2, %v2078_v40 }
 0xf57   :  { %3380 = vmatpush3.bf16.msra.mxu1 %v2235_v48  ;;  %3381 = vmatprep.mubr.msk.bf16.mxu1 %vm3675_vm1, %v3674_v15 }
 0xf58   :  { %v2077_v45 = vpack.c.bf16 %v2069_v56, %v2069_v56  ;;  %3391 = vmatprep.subr.bf16.mxu1 %v3674_v15 }
 0xf5a   :  { %3364 = vmatmul.mubr.msk.bf16.vlgmr.msra.gmra.mrb[60].mxu0 %vm201_vm2, %v2077_v45 }
 0xf5b   :  { %3374 = vmatpush3.bf16.msra.mxu0 %v2187_v52  ;;  %3375 = vmatprep.mubr.msk.bf16.mxu0 %vm3675_vm1, %v3674_v15 }
 0xf5c   :  { %3385 = vmatprep.subr.bf16.mxu0 %v3674_v15 }
 0xf65   :  { %2421 = vrot.lane.b32.xlu0 %v4165_v55, %s3680_s29 }
 0xf9f   :  { %v2045_v53 = vpop.xlane.xlu1 %2044 }
 0xfa0   :  { %3616 = vrcp.f32 %v2045_v53 }
 0xfa3   :  { %v2048_v54 = vpop.xlane.xlu0 %2047 }
 0xfa4   :  { %3618 = vrcp.f32 %v2048_v54 }
 0xfa7   :  { %v2051_v57 = vpop.xlane.xlu1 %2050  ;;  %v2326_v50 = vpop.permute.xlu0 %2325 }
 0xfa8   :  { %3620 = vrcp.f32 %v2051_v57  ;;  %v2331_v32 = vsel %vm756_vm3, %v2326_v50, 0  ;;  %v3536_v57 = vld [vmem:[%s4488_s4 + $0x10] sm:$0xff]  }
 0xfaa   :  { %v3617_v58 = vpop.eup %3616 }
 0xfab   :  { %v2071_v59 = vmul.f32 %v3617_v58, %v4287_v12 }
 0xfad   :  { %v2079_v1 = vpack.c.bf16 %v2071_v59, %v2071_v59  ;;  %v3537_v59 = vld [vmem:[%s4488_s4 + $0x18] sm:$0xff]  }
 0xfae   :  { %v3619_v0 = vpop.eup %3618 }
 0xfaf   :  { %v2072_v49 = vmul.f32 %v3619_v0, %v4291_v17  ;;  %3376 = vmatmul.mubr.msk.bf16.vlgmr.msra.gmra.mrb[64].mxu0 %vm201_vm2, %v2079_v1  ;;  %v2057_v55 = vpop.xlane.xlu1 %2056 }
 0xfb0   :  { %3386 = vmatpush3.bf16.msra.mxu0 %v2283_v63  ;;  %3387 = vmatprep.mubr.msk.bf16.mxu0 %vm3675_vm1, %v3674_v15  ;;  %3622 = vrcp.f32 %v2057_v55 }
 0xfb1   :  { %v2080_v44 = vpack.c.bf16 %v2072_v49, %v2072_v49  ;;  %3397 = vmatprep.subr.bf16.mxu0 %v3674_v15 }
 0xfb2   :  { %v3621_v3 = vpop.eup %3620 }
 0xfb3   :  { %3382 = vmatmul.mubr.msk.bf16.vlgmr.msra.gmra.mrb[60].mxu1 %vm201_vm2, %v2080_v44  ;;  %v2073_v7 = vmul.f32 %v3621_v3, %v4297_v23  ;;  %v2374_v8 = vpop.permute.xlu1 %2373 }
 0xfb4   :  { %3392 = vmatpush3.bf16.msra.mxu1 %v2331_v32  ;;  %3393 = vmatprep.mubr.msk.bf16.mxu1 %vm3675_vm1, %v3674_v15  ;;  %v2379_v4 = vsel %vm756_vm3, %v2374_v8, 0 }
 0xfb5   :  { %3403 = vmatprep.subr.bf16.mxu1 %v3674_v15  ;;  %v2081_v62 = vpack.c.bf16 %v2073_v7, %v2073_v7 }
 0xfb7   :  { %3388 = vmatmul.mubr.msk.bf16.vlgmr.msra.gmra.mrb[68].mxu0 %vm201_vm2, %v2081_v62 }
 0xfb8   :  { %3398 = vmatpush3.bf16.msra.mxu0 %v2379_v4  ;;  %3399 = vmatprep.mubr.msk.bf16.mxu0 %vm3675_vm1, %v3674_v15 }
 0xfb9   :  { %3409 = vmatprep.subr.bf16.mxu0 %v3674_v15 }
 0xfba   :  { %v3623_v10 = vpop.eup %3622 }
 0xfbb   :  { %v2075_v12 = vmul.f32 %v3623_v10, %v4301_v25 }
 0xfbd   :  { %v2083_v13 = vpack.c.bf16 %v2075_v12, %v2075_v12 }
 0xfbf   :  { %3400 = vmatmul.mubr.msk.bf16.vlgmr.msra.gmra.mrb[72].mxu0 %vm201_vm2, %v2083_v13 }
 0xfc0   :  { %3413 = vmatprep.mubr.msk.bf16.mxu0 %vm3675_vm1, %v3674_v15  ;;  %3410 = vmatpush3.bf16.msra.mxu0 %v3536_v57 }
 0xfc1   :  { %3411 = vmatprep.subr.bf16.mxu0 %v3674_v15 }
 0xfc4   :  { %3412 = vmatpush3.bf16.msra.mxu0 %v3537_v59 }
 0xfc5   :  { %3425 = vmatprep.subr.bf16.mxu0 %v3674_v15 }
 0xfd8   :  { %v2054_v14 = vpop.xlane.xlu0 %2053 }
 0xfd9   :  { %3624 = vrcp.f32 %v2054_v14 }
 0xfdc   :  { %v2060_v6 = vpop.xlane.xlu0 %2059 }
 0xfdd   :  { %3626 = vrcp.f32 %v2060_v6 }
 0xfe0   :  { %v2422_v18 = vpop.permute.xlu0 %2421 }
 0xfe1   :  { %v2427_v20 = vsel %vm756_vm3, %v2422_v18, 0 }
 0xfe3   :  { %v3625_v2 = vpop.eup %3624 }
 0xfe4   :  { %v2074_v17 = vmul.f32 %v3625_v2, %v4311_v21 }
 0xfe6   :  { %v2082_v31 = vpack.c.bf16 %v2074_v17, %v2074_v17 }
 0xfe7   :  { %v3627_v19 = vpop.eup %3626 }
 0xfe8   :  { %3394 = vmatmul.mubr.msk.bf16.vlgmr.msra.gmra.mrb[64].mxu1 %vm201_vm2, %v2082_v31  ;;  %v2076_v23 = vmul.f32 %v3627_v19, %v4315_v38 }
 0xfe9   :  { %3404 = vmatpush3.bf16.msra.mxu1 %v2427_v20  ;;  %3405 = vmatprep.mubr.msk.bf16.mxu1 %vm3675_vm1, %v3674_v15 }
 0xfea   :  { %3417 = vmatprep.subr.bf16.mxu1 %v3674_v15  ;;  %v2084_v24 = vpack.c.bf16 %v2076_v23, %v2076_v23 }
 0xff0   :  { %3406 = vmatmul.mubr.msk.bf16.vlgmr.msra.gmra.mrb[68].mxu1 %vm201_vm2, %v2084_v24  ;;  %v4387_v24 = vld [vmem:[%s4492_s8 + $0x8] sm:$0x3f] }
 0xff1   :  { %3421 = vmatprep.mubr.msk.bf16.mxu1 %vm3675_vm1, %v3674_v15  ;;  %v2596_v59 = vrot.slane %v4387_v24, %v1263_v11  ;;  %v3540_v11 = vld [vmem:[%s4491_s7 + $0x20] sm:$0xff]  }
0x1029   :  { %v2175_v25 = vpop.f32.mrb[56].mxu1 }
0x102a   :  { %v3371_v26 = vpop.f32.mrb[57].mxu1 }
0x102b   :  { %v2178_v27 = vpop.f32.mrb[58].mxu1 }
0x102c   :  { %v3372_v30 = vpop.f32.mrb[59].mxu1 }
0x102d   :  { %v2127_v33 = vpop.f32.mrb[60].mxu0 }
0x102e   :  { %v3365_v34 = vpop.f32.mrb[61].mxu0 }
0x102f   :  { %v2130_v35 = vpop.f32.mrb[62].mxu0 }
0x1030   :  { %v3366_v51 = vpop.f32.mrb[63].mxu0 }
0x1082   :  { %v2223_v42 = vpop.f32.mrb[64].mxu0 }
0x1083   :  { %v3377_v21 = vpop.f32.mrb[65].mxu0 }
0x1084   :  { %v2226_v37 = vpop.f32.mrb[66].mxu0 }
0x1085   :  { %v3378_v5 = vpop.f32.mrb[67].mxu0 }
0x1086   :  { %v2271_v38 = vpop.f32.mrb[60].mxu1 }
0x1087   :  { %v3509_v9 = vpack.i.bf16 %v2271_v38, %v2223_v42  ;;  %v3383_v22 = vpop.f32.mrb[61].mxu1 }
0x1088   :  { %v2274_v39 = vpop.f32.mrb[62].mxu1 }
0x1089   :  { %v3384_v40 = vpop.f32.mrb[63].mxu1  ;;  %3510 = vrot.lane.b32.xlu1 %v3509_v9, %s3681_s0 }
0x108a   :  { %v2319_v47 = vpop.f32.mrb[68].mxu0 }
0x108b   :  { %v3389_v48 = vpop.f32.mrb[69].mxu0 }
0x108c   :  { %v2322_v56 = vpop.f32.mrb[70].mxu0 }
0x108d   :  { %v3390_v45 = vpop.f32.mrb[71].mxu0  ;;  %v3539_v56 = vld [vmem:[%s4489_s5 + $0x18] sm:$0xff]  }
0x1092   :  { %v2415_v52 = vpop.f32.mrb[72].mxu0 }
0x1093   :  { %v3401_v46 = vpop.f32.mrb[73].mxu0 }
0x1094   :  { %v2418_v53 = vpop.f32.mrb[74].mxu0 }
0x1095   :  { %v3402_v54 = vpop.f32.mrb[75].mxu0 }
0x10bb   :  { %v2367_v58 = vpop.f32.mrb[64].mxu1 }
0x10bc   :  { %v3514_v1 = vpack.i.bf16 %v2367_v58, %v2319_v47  ;;  %v3395_v0 = vpop.f32.mrb[65].mxu1 }
0x10bd   :  { %v2370_v63 = vpop.f32.mrb[66].mxu1 }
0x10be   :  { %v3396_v49 = vpop.f32.mrb[67].mxu1  ;;  %3515 = vrot.lane.b32.xlu0 %v3514_v1, %s3682_s21 }
0x10c3   :  { %v2463_v50 = vpop.f32.mrb[68].mxu1 }
0x10c4   :  { %v3519_v55 = vpack.i.bf16 %v2463_v50, %v2415_v52  ;;  %v3407_v44 = vpop.f32.mrb[69].mxu1  ;;  %v2602_v50 = vrot.slane %v4387_v24, %v1269_v16  ;;  %v3542_v16 = vld [vmem:[%s4491_s7 + $0x30] sm:$0xff]  }
0x10c5   :  { %v2466_v3 = vpop.f32.mrb[70].mxu1 }
0x10c6   :  { %v3408_v32 = vpop.f32.mrb[71].mxu1  ;;  %3520 = vrot.lane.b32.xlu1 %v3519_v55, %s3683_s22 }
0x10fb   :  { %v3511_v7 = vpop.permute.xlu1 %3510 }
0x10fc   :  { %v3513_v62 = vunpack.i.h.bf16 %v3511_v7  ;;  %v3512_v4 = vunpack.i.l.bf16 %v3511_v7  ;;  %v3541_v7 = vld [vmem:[%s4491_s7 + $0x28] sm:$0xff]  }
0x10fe   :  { %v2494_v14 = vsel %vm201_vm2, %v2175_v25, %v3513_v62  ;;  %v2493_v6 = vsel %vm201_vm2, %v2127_v33, %v3512_v4  ;;  %v2508_v25 = vrot.slane %v4387_v24, %v1175_v43  ;;  %v3050_v62 = vld [vmem:[%s4490_s6 + $0x1] ss:$0 sm:$0xff] }
0x1130   :  { %v3516_v8 = vpop.permute.xlu0 %3515 }
0x1131   :  { %v3518_v10 = vunpack.i.h.bf16 %v3516_v8  ;;  %v3517_v12 = vunpack.i.l.bf16 %v3516_v8  ;;  %v3543_v8 = vld [vmem:[%s4491_s7 + $0x38] sm:$0xff]  }
0x1133   :  { %v2496_v18 = vsel %vm1162_vm4, %v2494_v14, %v3518_v10  ;;  %v2495_v31 = vsel %vm1162_vm4, %v2493_v6, %v3517_v12 }
0x1138   :  { %v3521_v13 = vpop.permute.xlu1 %3520 }
0x1139   :  { %v3523_v2 = vunpack.i.h.bf16 %v3521_v13  ;;  %v3522_v17 = vunpack.i.l.bf16 %v3521_v13 }
0x113b   :  { %v2498_v19 = vsel %vm1165_vm5, %v2496_v18, %v3523_v2  ;;  %v2497_v20 = vsel %vm1165_vm5, %v2495_v31, %v3522_v17 }
0x113c   :  { %v2499_v23 = vpack.c.bf16 %v2498_v19, %v2497_v20 }
0x113e   :  { %3414 = vmatmul.mubr.msk.bf16.vlgmr.msra.gmra.mrb[76].mxu0 %vm53_vm0, %v2499_v23 }
0x113f   :  { %3433 = vmatprep.mubr.msk.bf16.mxu0 %vm3675_vm1, %v3674_v15  ;;  %3426 = vmatpush3.bf16.msra.mxu0 %v3540_v11 }
0x1140   :  { %3427 = vmatprep.subr.bf16.mxu0 %v3674_v15 }
0x1143   :  { %3428 = vmatpush3.bf16.msra.mxu0 %v3541_v7  ;;  %v2806_v7 = vrot.slane %v4387_v24, %v1471_v29  ;;  %v3546_v29 = vld [vmem:[%s4496_s12] sm:$0xff]   ;;  %s3684_s12 = smov [#allocation2]  }
0x1144   :  { %3429 = vmatprep.subr.bf16.mxu0 %v3674_v15  ;;  %s2962_s0 = sshll.u32 %s3684_s12, 4  ;;  %s2963_s0 = int_to_ptr.vmem [resolvable:$true] %s2962_s0 }
0x1145   :  { %p3655_p1 = scmp.lt.s32.totalorder %s2963_s0, %s2963_s0 }
0x1147   :  { %3430 = vmatpush3.bf16.msra.mxu0 %v3542_v16 }
0x1148   :  { %3431 = vmatprep.subr.bf16.mxu0 %v3674_v15 }
0x114b   :  { %3432 = vmatpush3.bf16.msra.mxu0 %v3543_v8 }
0x1211   :  { %v2558_v26 = vpop.f32.mrb[76].mxu0 }
0x1212   :  { %v2559_v27 = vadd.f32 %v2558_v26, %v2508_v25  ;;  %v3415_v30 = vpop.f32.mrb[77].mxu0 }
0x1213   :  { %v2561_v33 = vpop.f32.mrb[78].mxu0 }
0x1214   :  { %v2562_v34 = vadd.f32 %v2561_v33, %v2508_v25  ;;  %v3416_v35 = vpop.f32.mrb[79].mxu0  ;;  %v2565_v51 = vadd.f32 %v2559_v27, %v4126_v36 }
0x1216   :  { %v2567_v42 = vsel %vm53_vm0, %v2565_v51, 0.0  ;;  %v2566_v21 = vadd.f32 %v2562_v34, %v4128_v28  ;;  %v3538_v28 = vld [vmem:[%s4489_s5 + $0x10] sm:$0xff]  }
0x1217   :  { %2568 = vadd.xlane.f32.xlu0 %v2567_v42  ;;  %3418 = vmatpush3.bf16.msra.mxu1 %v3538_v28 }
0x1218   :  { %v2570_v37 = vsel %vm53_vm0, %v2566_v21, 0.0  ;;  %3419 = vmatprep.subr.bf16.mxu1 %v3674_v15 }
0x1219   :  { %2571 = vadd.xlane.f32.xlu1 %v2570_v37 }
0x121b   :  { %3420 = vmatpush3.bf16.msra.mxu1 %v3539_v56 }
0x121c   :  { %3437 = vmatprep.subr.bf16.mxu1 %v3674_v15 }
0x12a4   :  { %v2569_v5 = vpop.xlane.xlu0 %2568 }
0x12a5   :  { %v2573_v38 = vmul.f32 0.03125, %v2569_v5 }
0x12a6   :  { %v2572_v9 = vpop.xlane.xlu1 %2571 }
0x12a7   :  { %v2575_v43 = vsub.f32 %v2565_v51, %v2573_v38  ;;  %v2574_v22 = vmul.f32 0.03125, %v2572_v9  ;;  %v2706_v38 = vrot.slane %v4387_v24, %v1370_v60 }
0x12a9   :  { %v2576_v39 = vsub.f32 %v2566_v21, %v2574_v22  ;;  %v2577_v40 = vmul.f32 %v2575_v43, %v2575_v43 }
0x12ab   :  { %v2579_v47 = vsel %vm53_vm0, %v2577_v40, 0.0  ;;  %v2578_v48 = vmul.f32 %v2576_v39, %v2576_v39 }
0x12ac   :  { %2580 = vadd.xlane.f32.xlu0 %v2579_v47 }
0x12ad   :  { %v2582_v36 = vsel %vm53_vm0, %v2578_v48, 0.0 }
0x12b0   :  { %2583 = vadd.xlane.f32.xlu0 %v2582_v36 }
0x1339   :  { %v2581_v45 = vpop.xlane.xlu0 %2580 }
0x133a   :  { %v2585_v52 = vmul.f32 0.03125, %v2581_v45 }
0x133c   :  { %v2587_v46 = vadd.f32 1e-12, %v2585_v52 }
0x133d   :  { %v2584_v53 = vpop.xlane.xlu0 %2583 }
0x133e   :  { %3628 = vrsqrt.f32 %v2587_v46  ;;  %v2586_v54 = vmul.f32 0.03125, %v2584_v53 }
0x1340   :  { %v2588_v57 = vadd.f32 1e-12, %v2586_v54 }
0x1342   :  { %3630 = vrsqrt.f32 %v2588_v57 }
0x1348   :  { %v3629_v58 = vpop.eup %3628 }
0x1349   :  { %v2591_v1 = vmul.f32 %v3629_v58, %v2575_v43 }
0x134b   :  { %v2597_v63 = vmul.f32 %v2596_v59, %v2591_v1 }
0x134c   :  { %v3631_v0 = vpop.eup %3630 }
0x134d   :  { %v2592_v49 = vmul.f32 %v3631_v0, %v2576_v39  ;;  %v2603_v44 = vadd.f32 %v2602_v50, %v2597_v63  ;;  %v3544_v0 = vld [vmem:[%s4494_s10] sm:$0xff]   ;;  %v3545_v63 = vld [vmem:[%s4494_s10 + $0x8] sm:$0xff]  }
0x134f   :  { %v2598_v55 = vmul.f32 %v2596_v59, %v2592_v49 }
0x1351   :  { %v2604_v3 = vadd.f32 %v2602_v50, %v2598_v55 }
0x1353   :  { %v2605_v32 = vpack.c.bf16 %v2604_v3, %v2603_v44 }
0x1355   :  { %3422 = vmatmul.mubr.msk.bf16.vlgmr.msra.gmra.mrb[72].mxu1 %vm53_vm0, %v2605_v32 }
0x1356   :  { %3441 = vmatprep.mubr.msk.bf16.mxu1 %vm3675_vm1, %v3674_v15  ;;  %3438 = vmatpush3.bf16.msra.mxu1 %v3544_v0 }
0x1357   :  { %3439 = vmatprep.subr.bf16.mxu1 %v3674_v15 }
0x135a   :  { %3440 = vmatpush3.bf16.msra.mxu1 %v3545_v63 }
0x135b   :  { %3445 = vmatprep.subr.bf16.mxu1 %v3674_v15 }
0x1428   :  { %v2668_v4 = vpop.f32.mrb[72].mxu1 }
0x1429   :  { %v2669_v10 = vadd.f32 %v3050_v62, %v2668_v4  ;;  %v3423_v12 = vpop.f32.mrb[73].mxu1  ;;  %v2812_v4 = vrot.slane %v4387_v24, %v1477_v61  ;;  %v3067_v61 = vld [vmem:[%s4495_s11] ss:$0 sm:$0xff]  ;;  %s3650_s11 = scalar_lea.vmem %s2963_s0, 32 }
0x142a   :  { %v2671_v13 = vpop.f32.mrb[74].mxu1  ;;  %p3651_p0 = scmp.ne.s32.totalorder %s2963_s0, %s3650_s11  ;;  %p3656_p2 = scmp.lt.s32.totalorder %s3650_s11, %s3650_s11 }
0x142b   :  { %v2677_v14 = vmul.f32 0.044715, %v2669_v10  ;;  %v2672_v6 = vadd.f32 %v3050_v62, %v2671_v13  ;;  %v3424_v2 = vpop.f32.mrb[75].mxu1  ;;  %v2675_v35 = vmul.f32 0.5, %v2669_v10 }
0x142c   :  { %p3657_p3 = por %p3656_p2, %p3655_p1 }
0x142d   :  { %v2679_v17 = vmul.f32 %v2677_v14, %v2669_v10  ;;  %v2678_v18 = vmul.f32 0.044715, %v2672_v6  ;;  %v2676_v51 = vmul.f32 0.5, %v2672_v6 }
0x142e   :  { %p3658_p4 = pnand %p3657_p3, %p3651_p0 }
0x142f   :  { %v2681_v31 = vmul.f32 %v2679_v17, %v2669_v10  ;;  %v2680_v19 = vmul.f32 %v2678_v18, %v2672_v6 }
0x1431   :  { %v2683_v20 = vadd.f32 %v2681_v31, %v2669_v10  ;;  %v2682_v23 = vmul.f32 %v2680_v19, %v2672_v6 }
0x1433   :  { %v2685_v25 = vmul.f32 0.7978846, %v2683_v20  ;;  %v2684_v26 = vadd.f32 %v2682_v23, %v2672_v6 }
0x1435   :  { %3632 = vtanh.f32 %v2685_v25  ;;  %v2686_v27 = vmul.f32 0.7978846, %v2684_v26 }
0x1437   :  { %3634 = vtanh.f32 %v2686_v27 }
0x143f   :  { %v3633_v30 = vpop.eup %3632 }
0x1440   :  { %v2689_v33 = vadd.f32 1.0, %v3633_v30 }
0x1441   :  { %v3635_v34 = vpop.eup %3634 }
0x1442   :  { %v2690_v42 = vadd.f32 1.0, %v3635_v34  ;;  %v2691_v21 = vmul.f32 %v2689_v33, %v2675_v35 }
0x1444   :  { %v2692_v37 = vmul.f32 %v2690_v42, %v2676_v51 }
0x1446   :  { %v2693_v5 = vpack.c.bf16 %v2692_v37, %v2691_v21 }
0x1448   :  { %3434 = vmatmul.mubr.msk.bf16.vlgmr.msra.gmra.mrb[80].mxu0 %vm1396_vm6, %v2693_v5 }
0x151b   :  { %v2768_v9 = vpop.f32.mrb[80].mxu0 }
0x151c   :  { %v2769_v43 = vadd.f32 %v2768_v9, %v2706_v38  ;;  %v3435_v22 = vpop.f32.mrb[81].mxu0 }
0x151d   :  { %v2771_v39 = vpop.f32.mrb[82].mxu0 }
0x151e   :  { %v2772_v40 = vadd.f32 %v2771_v39, %v2706_v38  ;;  %v3436_v47 = vpop.f32.mrb[83].mxu0  ;;  %v2775_v48 = vadd.f32 %v2769_v43, %v2603_v44 }
0x1520   :  { %v2777_v36 = vsel %vm53_vm0, %v2775_v48, 0.0  ;;  %v2776_v28 = vadd.f32 %v2772_v40, %v2604_v3 }
0x1521   :  { %2778 = vadd.xlane.f32.xlu1 %v2777_v36 }
0x1522   :  { %v2780_v56 = vsel %vm53_vm0, %v2776_v28, 0.0 }
0x1523   :  { %2781 = vadd.xlane.f32.xlu0 %v2780_v56 }
0x15ae   :  { %v2779_v45 = vpop.xlane.xlu1 %2778 }
0x15af   :  { %v2783_v52 = vmul.f32 0.03125, %v2779_v45 }
0x15b0   :  { %v2782_v46 = vpop.xlane.xlu0 %2781 }
0x15b1   :  { %v2785_v53 = vsub.f32 %v2775_v48, %v2783_v52  ;;  %v2784_v54 = vmul.f32 0.03125, %v2782_v46 }
0x15b3   :  { %v2786_v60 = vsub.f32 %v2776_v28, %v2784_v54  ;;  %v2787_v57 = vmul.f32 %v2785_v53, %v2785_v53 }
0x15b5   :  { %v2789_v58 = vsel %vm53_vm0, %v2787_v57, 0.0  ;;  %v2788_v59 = vmul.f32 %v2786_v60, %v2786_v60 }
0x15b6   :  { %2790 = vadd.xlane.f32.xlu1 %v2789_v58 }
0x15b7   :  { %v2792_v1 = vsel %vm53_vm0, %v2788_v59, 0.0 }
0x15b8   :  { %2793 = vadd.xlane.f32.xlu0 %v2792_v1 }
0x1643   :  { %v2791_v49 = vpop.xlane.xlu1 %2790 }
0x1644   :  { %v2795_v50 = vmul.f32 0.03125, %v2791_v49 }
0x1645   :  { %v2794_v55 = vpop.xlane.xlu0 %2793 }
0x1646   :  { %v2797_v44 = vadd.f32 1e-12, %v2795_v50  ;;  %v2796_v3 = vmul.f32 0.03125, %v2794_v55 }
0x1648   :  { %3636 = vrsqrt.f32 %v2797_v44  ;;  %v2798_v32 = vadd.f32 1e-12, %v2796_v3 }
0x164a   :  { %3638 = vrsqrt.f32 %v2798_v32 }
0x1652   :  { %v3637_v11 = vpop.eup %3636 }
0x1653   :  { %v2801_v16 = vmul.f32 %v3637_v11, %v2785_v53 }
0x1654   :  { %v3639_v8 = vpop.eup %3638 }
0x1655   :  { %v2802_v62 = vmul.f32 %v3639_v8, %v2786_v60  ;;  %v2807_v10 = vmul.f32 %v2806_v7, %v2801_v16 }
0x1657   :  { %v2808_v12 = vmul.f32 %v2806_v7, %v2802_v62  ;;  %v2813_v14 = vadd.f32 %v2812_v4, %v2807_v10 }
0x1659   :  { %v2814_v13 = vadd.f32 %v2812_v4, %v2808_v12 }
0x165b   :  { %v2816_v6 = vrot.slane %v2814_v13, 7 }
0x165d   :  { %v2819_v2 = vsel %vm2818_vm7, %v2813_v14, %v2816_v6 }
0x165e   :  { %v2820_v17 = vpack.c.bf16 %v2819_v2, %v2819_v2 }
0x1660   :  { %3442 = vmatmul.mubr.msk.bf16.vlgmr.msra.gmra.mrb[76].mxu1 %vm53_vm0, %v2820_v17 }
0x1661   :  { %3449 = vmatprep.mubr.msk.bf16.mxu1 %vm3675_vm1, %v3674_v15  ;;  %3446 = vmatpush3.bf16.msra.mxu1 %v3546_v29 }
0x1662   :  { %3447 = vmatprep.subr.bf16.mxu1 %v3674_v15  ;;  %v3071_v15 = vld [vmem:[%s4497_s13] ss:$0 sm:$0xff] }
0x1665   :  { %3448 = vmatpush3.bf16.msra.mxu1 %v3547_v41 }
0x1733   :  { %v2881_v24 = vpop.f32.mrb[76].mxu1 }
0x1734   :  { %v2882_v18 = vadd.f32 %v3067_v61, %v2881_v24  ;;  %v3443_v31 = vpop.f32.mrb[77].mxu1 }
0x1735   :  { %v2884_v19 = vpop.f32.mrb[78].mxu1 }
0x1736   :  { %3640 = vtanh.f32 %v2882_v18  ;;  %v3444_v20 = vpop.f32.mrb[79].mxu1 }
0x1740   :  { %v3641_v23 = vpop.eup %3640 }
0x1741   :  { %v2888_v25 = vpack.c.bf16 %v3641_v23, %v3641_v23 }
0x1743   :  { %3450 = vmatmul.mubr.msk.bf16.vlgmr.msra.gmra.mrb[80].mxu1 %vm53_vm0, %v2888_v25 }
0x1816   :  { %v2949_v26 = vpop.f32.mrb[80].mxu1 }
0x1817   :  { %v2950_v27 = vadd.f32 %v3071_v15, %v2949_v26  ;;  %v3451_v30 = vpop.f32.mrb[81].mxu1 }
0x1818   :  { %v2952_v33 = vpop.f32.mrb[82].mxu1 }
0x1819   :  { %2955 = vst [vmem:[#allocation2] sm:$0x3] %v2950_v27  ;;  %v3452_v34 = vpop.f32.mrb[83].mxu1 }
0x181a   :  { %3661 = shalt.err (!%p3658_p4)
}
0x181b   :  { %s3662_s13 = scalar_lea.hbm %s4498_s14, 32 }
0x181c   :  { %p3663_p5 = scmp.ne.s32.totalorder %s4498_s14, %s3662_s13  ;;  %p3666_p6 = scmp.lt.u32.totalorder %s3662_s13, %s4498_s14 }
0x181e   :  { %p3668_p7 = pnand %p3666_p6, %p3663_p5 }
0x1820   :  { %3671 = shalt.err (!%p3668_p7)
}
0x1821   :  { %2965 = dma.vmem_to_hbm [thread:$0]  %s2963_s0, 32, %s4498_s14, [#allocation3]  }
0x1822   :  { %3672 = dma.done.wait [#allocation3], 32  }
0x1823   :  { %3673 = vsyncadd [#allocation3], 4294967264 }
0x1824   :  { %2969 = vsyncpa [#allocation3], 1 }

</bundles_post_ra>
